<compile_context>
chip_gen: v7x
topology: tpu7x:2x2x1
jax: 0.10.0
libtpu: 0.0.40
codegen_flags: <defaults>
</compile_context>

<pallas_src>
import functools
import math

import jax
import jax.numpy as jnp
from jax.experimental import pallas as pl
from jax.experimental.pallas import tpu as pltpu


# --------------------------------------------------------------------------
# helpers used inside the kernel
# --------------------------------------------------------------------------
def _erf_poly(x):
    # Abramowitz & Stegun 7.1.26 rational approximation of erf (max abs
    # error ~1.5e-7).  Avoids relying on a lax.erf lowering inside Mosaic.
    p = 0.3275911
    a1, a2, a3, a4, a5 = (0.254829592, -0.284496736, 1.421413741,
                          -1.453152027, 1.061405429)
    sign = jnp.where(x >= 0.0, 1.0, -1.0)
    ax = jnp.abs(x)
    t = 1.0 / (1.0 + p * ax)
    poly = ((((a5 * t + a4) * t + a3) * t + a2) * t + a1) * t
    return sign * (1.0 - poly * jnp.exp(-ax * ax))


def _gelu_exact(x):
    # torch F.gelu(approximate='none'): x * 0.5 * (1 + erf(x / sqrt(2)))
    return 0.5 * x * (1.0 + _erf_poly(x * 0.7071067811865476))


def _layernorm(x, w, b, eps):
    mu = jnp.mean(x, axis=-1, keepdims=True)
    var = jnp.mean(jnp.square(x - mu), axis=-1, keepdims=True)
    return (x - mu) * jax.lax.rsqrt(var + eps) * w + b


# --------------------------------------------------------------------------
# fused kernel: patch-embed (l==0) -> pre-LN encoder layer l -> classifier
# head (l==L-1).  Token activations for Bt images live in one VMEM scratch
# carried across the layer grid axis.
# --------------------------------------------------------------------------
def _vit_kernel(patches_ref, pw_ref, pb_ref,
                ln1w_ref, ln1b_ref, wqkv_ref, bqkv_ref, wo_ref, bo_ref,
                ln2w_ref, ln2b_ref, w1_ref, b1_ref, w2_ref, b2_ref,
                clnw_ref, clnb_ref, cw_ref, cb_ref,
                logits_ref,
                tok_ref,
                *, batch_tile, seq, num_heads, head_dim, eps):
    layer = pl.program_id(1)
    num_layers = pl.num_programs(1)
    bf16 = jnp.bfloat16
    bt, s, hd = batch_tile, seq, head_dim
    dim = num_heads * head_dim
    rows = bt * s

    # ---- patch embedding (Conv2d k=stride=P == patches @ W + b), l == 0 ----
    @pl.when(layer == 0)
    def _():
        patches = patches_ref[...].reshape(rows, -1)            # [rows, CPP] bf16
        tok_ref[...] = (jnp.dot(patches, pw_ref[...],
                                preferred_element_type=jnp.float32)
                        + pb_ref[...])

    x = tok_ref[...]                                            # [rows, D] f32

    # ---- self-attention block (norm_first=True) ----
    xn = _layernorm(x, ln1w_ref[0], ln1b_ref[0], eps).astype(bf16)
    qkv = (jnp.dot(xn, wqkv_ref[0], preferred_element_type=jnp.float32)
           + bqkv_ref[0]).astype(bf16)                          # single bf16 cast
    qkv3 = qkv.reshape(bt, s, 3 * dim)                          # leading-dim split

    def head_batch(part):
        # one q/k/v part -> [num_heads*bt, s, hd] (head-major batch order);
        # per-head lane slices concatenated along a leading batch axis.
        base = part * dim
        return jnp.concatenate(
            [qkv3[:, :, base + h * hd: base + (h + 1) * hd]
             for h in range(num_heads)], axis=0)

    q, k, v = head_batch(0), head_batch(1), head_batch(2)       # [H*bt, s, hd]

    scale = 1.0 / math.sqrt(head_dim)
    scores = jnp.einsum('bqd,bkd->bqk', q, k,
                        preferred_element_type=jnp.float32) * scale
    scores = scores - jnp.max(scores, axis=-1, keepdims=True)
    p = jnp.exp(scores)
    p = p * pl.reciprocal(jnp.sum(p, axis=-1, keepdims=True), approx=True)
    ctx = jnp.einsum('bqk,bkd->bqd', p.astype(bf16), v,
                     preferred_element_type=jnp.float32)        # [H*bt, s, hd]

    # merge heads back to a lane-dense [rows, D] slab (no scratch round trip)
    ctx4 = ctx.reshape(num_heads, bt, s, hd)
    ctx_sd = jnp.concatenate([ctx4[h] for h in range(num_heads)], axis=-1)
    ctx2d = ctx_sd.reshape(rows, dim).astype(bf16)

    sa = (jnp.dot(ctx2d, wo_ref[0], preferred_element_type=jnp.float32)
          + bo_ref[0])
    x = x + sa                               # dropout(0.1) -> identity (eval)

    # ---- feed-forward block ----
    # NOTE: for very large Bt*S x MLP_size, chunk this over ~256-row blocks
    # (lax.fori_loop, unroll=True) to bound the f32 pre-GELU live range.
    xn2 = _layernorm(x, ln2w_ref[0], ln2b_ref[0], eps).astype(bf16)
    h1 = (jnp.dot(xn2, w1_ref[0], preferred_element_type=jnp.float32)
          + b1_ref[0])
    h1 = _gelu_exact(h1).astype(bf16)
    h2 = (jnp.dot(h1, w2_ref[0], preferred_element_type=jnp.float32)
          + b2_ref[0])
    x = x + h2                               # dropout(0.1) -> identity (eval)

    tok_ref[...] = x                         # carry to the next layer step

    # ---- classifier head (LayerNorm + Linear on token 0 of each image) ----
    @pl.when(layer == num_layers - 1)
    def _():
        cls = jnp.concatenate(
            [tok_ref[i * s:i * s + 1, :] for i in range(bt)], axis=0)  # [bt, D]
        cn = _layernorm(cls, clnw_ref[...], clnb_ref[...], eps)
        logits_ref[0] = (jnp.dot(cn, cw_ref[...],
                                 preferred_element_type=jnp.float32)
                         + cb_ref[...])


# --------------------------------------------------------------------------
# VMEM-aware batch-tile selection
# --------------------------------------------------------------------------
def _vmem_budget_bytes():
    try:
        cap = int(pltpu.get_tpu_info().vmem_capacity_bytes)
    except Exception:
        cap = 64 * 1024 * 1024                 # conservative (v7x-sized) fallback
    # 85% of per-core VMEM: headroom for Mosaic internal scratch / buffering.
    return max(32 * 1024 * 1024, min(int(cap * 0.85), 110 * 1024 * 1024))


def _vmem_estimate_bytes(bt, *, S, CPP, D, M, H):
    f32, bf16 = 4, 2
    rows = bt * S
    hd_pad = max(128, -(-(D // H) // 128) * 128)      # per-head lane padding
    layer_w = (D * 3 * D + D * D + 2 * D * M) * bf16 + (9 * D + M) * f32
    return (2 * layer_w                         # double-buffered weight stream
            + CPP * D * bf16                    # patch-embed weight
            + 2 * bt * S * CPP * bf16           # patches input (double-buffered)
            + rows * D * f32                    # token-carry scratch
            + rows * 3 * D * (f32 + bf16)       # qkv (f32 acc + bf16 copy)
            + 3 * bt * H * S * hd_pad * bf16    # per-head q/k/v batches
            + 2 * bt * H * S * S * f32          # scores + softmax
            + rows * M * (f32 + bf16)           # MLP hidden
            + 4 * rows * D * f32)               # residual / ctx temporaries


def _pick_batch_tile(B, S, vmem_ok, target_rows=256):
    divisors = [d for d in range(1, B + 1) if B % d == 0]
    bt = None
    for d in divisors:                          # smallest tile reaching target rows
        if d * S >= target_rows and vmem_ok(d):
            bt = d
            break
    if bt is None:                              # else: largest tile that fits
        feasible = [d for d in divisors if vmem_ok(d)]
        bt = feasible[-1] if feasible else 1
    # keep >= 2 steps on the "parallel" batch axis when possible (v7x: 2 TCs)
    while bt > 1 and B // bt < 2:
        bt = max(d for d in divisors if d < bt)
    return bt


# --------------------------------------------------------------------------
# wrapper: host-side patch extraction (layout plumbing) + one pallas_call
# --------------------------------------------------------------------------
def vit_forward(x, params, *, patch_size, num_heads):
    B, C, H_img, W_img = x.shape
    P = patch_size
    nh, nw = H_img // P, W_img // P
    S = nh * nw
    CPP = C * P * P
    # non-overlapping patches ordered (c, kh, kw) to match the Conv2d weight;
    # pre-cast to bf16 (MXU operand dtype) to halve HBM read + VMEM use.
    patches = (x.reshape(B, C, nh, P, nw, P)
                .transpose(0, 2, 4, 1, 3, 5)
                .reshape(B, S, CPP)
                .astype(jnp.bfloat16))

    L = params['wqkv'].shape[0]
    D = params['patch_w'].shape[1]
    M = params['w1'].shape[2]
    NC = params['cls_w'].shape[1]
    head_dim = D // num_heads

    vmem_budget = _vmem_budget_bytes()
    vmem_ok = lambda bt: _vmem_estimate_bytes(
        bt, S=S, CPP=CPP, D=D, M=M, H=num_heads) <= vmem_budget
    Bt = _pick_batch_tile(B, S, vmem_ok)
    rows = Bt * S

    kernel = functools.partial(_vit_kernel, batch_tile=Bt, seq=S,
                               num_heads=num_heads, head_dim=head_dim, eps=1e-5)

    batch_map = lambda b, l: (b, 0, 0)
    layer_map = lambda b, l: (l, 0, 0)
    const_map = lambda b, l: (0, 0)

    per_layer = ['ln1_w', 'ln1_b', 'wqkv', 'bqkv', 'wo', 'bo',
                 'ln2_w', 'ln2_b', 'w1', 'b1', 'w2', 'b2']
    cls_names = ['cls_ln_w', 'cls_ln_b', 'cls_w', 'cls_b']

    args = ([patches, params['patch_w'], params['patch_b']]
            + [params[n] for n in per_layer]
            + [params[n] for n in cls_names])

    in_specs = ([pl.BlockSpec((Bt, S, CPP), batch_map),
                 pl.BlockSpec(params['patch_w'].shape, const_map),
                 pl.BlockSpec(params['patch_b'].shape, const_map)]
                + [pl.BlockSpec((1,) + params[n].shape[1:], layer_map)
                   for n in per_layer]
                + [pl.BlockSpec(params[n].shape, const_map)
                   for n in cls_names])

    logits = pl.pallas_call(
        kernel,
        out_shape=jax.ShapeDtypeStruct((B // Bt, Bt, NC), jnp.float32),
        grid=(B // Bt, L),
        in_specs=in_specs,
        out_specs=pl.BlockSpec((1, Bt, NC), batch_map),
        scratch_shapes=[pltpu.VMEM((rows, D), jnp.float32)],   # token carry
        compiler_params=pltpu.CompilerParams(
            dimension_semantics=("parallel", "arbitrary"),
            vmem_limit_bytes=vmem_budget),
    )(*args)
    return logits.reshape(B, NC)


# --------------------------------------------------------------------------
# deterministic synthetic parameters (shapes follow the nn.Module __init__);
# per-layer weights stacked along a leading layer axis, matmul weights in
# bf16 (pre-transposed for x @ W), LN params / biases in f32.
# --------------------------------------------------------------------------
def init_params(key, *, channels, patch_size, embed_dim, mlp_size,
                num_layers, num_classes):
    D, M, L = embed_dim, mlp_size, num_layers
    cpp = channels * patch_size * patch_size

    def nrm(k, shape, dtype=jnp.float32, scale=0.02):
        return (scale * jax.random.normal(k, shape)).astype(dtype)

    k = jax.random.split(key, 9)
    conv_w = nrm(k[0], (D, channels, patch_size, patch_size))
    return {
        'patch_w': conv_w.reshape(D, cpp).T.astype(jnp.bfloat16),  # [CPP, D]
        'patch_b': nrm(k[1], (1, D)),
        'ln1_w': jnp.ones((L, 1, D), jnp.float32),
        'ln1_b': jnp.zeros((L, 1, D), jnp.float32),
        'wqkv': nrm(k[2], (L, D, 3 * D), dtype=jnp.bfloat16),
        'bqkv': nrm(k[3], (L, 1, 3 * D)),
        'wo': nrm(k[4], (L, D, D), dtype=jnp.bfloat16),
        'bo': jnp.zeros((L, 1, D), jnp.float32),
        'ln2_w': jnp.ones((L, 1, D), jnp.float32),
        'ln2_b': jnp.zeros((L, 1, D), jnp.float32),
        'w1': nrm(k[5], (L, D, M), dtype=jnp.bfloat16),
        'b1': jnp.zeros((L, 1, M), jnp.float32),
        'w2': nrm(k[6], (L, M, D), dtype=jnp.bfloat16),
        'b2': jnp.zeros((L, 1, D), jnp.float32),
        'cls_ln_w': jnp.ones((1, D), jnp.float32),
        'cls_ln_b': jnp.zeros((1, D), jnp.float32),
        'cls_w': nrm(k[7], (D, num_classes)),
        'cls_b': nrm(k[8], (1, num_classes)),
    }


if __name__ == "__main__":
    # small, self-consistent config: 32x32 RGB images, 8x8 patches -> 16 tokens
    B, C, H, W = 4, 3, 32, 32
    PATCH, EMBED, MLP, HEADS, LAYERS, CLASSES = 8, 128, 256, 4, 2, 3

    key = jax.random.PRNGKey(0)
    pkey, xkey = jax.random.split(key)
    params = init_params(pkey, channels=C, patch_size=PATCH, embed_dim=EMBED,
                         mlp_size=MLP, num_layers=LAYERS, num_classes=CLASSES)
    x = jax.random.normal(xkey, (B, C, H, W), dtype=jnp.float32)

    fwd = jax.jit(functools.partial(vit_forward, patch_size=PATCH,
                                    num_heads=HEADS))
    out = jax.block_until_ready(fwd(x, params))
    assert out.shape == (B, CLASSES), out.shape
    assert bool(jnp.all(jnp.isfinite(out)))
    print("KERNEL_OK")
</pallas_src>

<mosaic_0001>
module attributes {stable_mosaic.version = 11 : i64} {
  func.func @_vit_kernel(%arg0: i32, %arg1: i32, %arg2: memref<2x16x192xbf16, #tpu.memory_space<vmem>>, %arg3: memref<192x128xbf16, #tpu.memory_space<vmem>>, %arg4: memref<1x128xf32, #tpu.memory_space<vmem>>, %arg5: memref<1x1x128xf32, #tpu.memory_space<vmem>>, %arg6: memref<1x1x128xf32, #tpu.memory_space<vmem>>, %arg7: memref<1x128x384xbf16, #tpu.memory_space<vmem>>, %arg8: memref<1x1x384xf32, #tpu.memory_space<vmem>>, %arg9: memref<1x128x128xbf16, #tpu.memory_space<vmem>>, %arg10: memref<1x1x128xf32, #tpu.memory_space<vmem>>, %arg11: memref<1x1x128xf32, #tpu.memory_space<vmem>>, %arg12: memref<1x1x128xf32, #tpu.memory_space<vmem>>, %arg13: memref<1x128x256xbf16, #tpu.memory_space<vmem>>, %arg14: memref<1x1x256xf32, #tpu.memory_space<vmem>>, %arg15: memref<1x256x128xbf16, #tpu.memory_space<vmem>>, %arg16: memref<1x1x128xf32, #tpu.memory_space<vmem>>, %arg17: memref<1x128xf32, #tpu.memory_space<vmem>>, %arg18: memref<1x128xf32, #tpu.memory_space<vmem>>, %arg19: memref<128x3xf32, #tpu.memory_space<vmem>>, %arg20: memref<1x3xf32, #tpu.memory_space<vmem>>, %arg21: memref<1x2x3xf32, #tpu.memory_space<vmem>>, %arg22: memref<32x128xf32, #tpu.memory_space<vmem>>) attributes {dimension_semantics = [#tpu.dimension_semantics<parallel>, #tpu.dimension_semantics<arbitrary>], iteration_bounds = array<i64: 2, 2>, scalar_prefetch = 0 : i64, scratch_operands = 1 : i64, tpu.core_type = #tpu.core_type<tc>, window_params = [{transform_indices = @transform_0, window_bounds = array<i64: 2, 16, 192>}, {pipeline_mode = #tpu.pipeline_mode<synchronous>, transform_indices = @transform_1, window_bounds = array<i64: 192, 128>}, {pipeline_mode = #tpu.pipeline_mode<synchronous>, transform_indices = @transform_2, window_bounds = array<i64: 1, 128>}, {transform_indices = @transform_3, window_bounds = array<i64: 1, 1, 128>}, {transform_indices = @transform_4, window_bounds = array<i64: 1, 1, 128>}, {transform_indices = @transform_5, window_bounds = array<i64: 1, 128, 384>}, {transform_indices = @transform_6, window_bounds = array<i64: 1, 1, 384>}, {transform_indices = @transform_7, window_bounds = array<i64: 1, 128, 128>}, {transform_indices = @transform_8, window_bounds = array<i64: 1, 1, 128>}, {transform_indices = @transform_9, window_bounds = array<i64: 1, 1, 128>}, {transform_indices = @transform_10, window_bounds = array<i64: 1, 1, 128>}, {transform_indices = @transform_11, window_bounds = array<i64: 1, 128, 256>}, {transform_indices = @transform_12, window_bounds = array<i64: 1, 1, 256>}, {transform_indices = @transform_13, window_bounds = array<i64: 1, 256, 128>}, {transform_indices = @transform_14, window_bounds = array<i64: 1, 1, 128>}, {pipeline_mode = #tpu.pipeline_mode<synchronous>, transform_indices = @transform_15, window_bounds = array<i64: 1, 128>}, {pipeline_mode = #tpu.pipeline_mode<synchronous>, transform_indices = @transform_16, window_bounds = array<i64: 1, 128>}, {pipeline_mode = #tpu.pipeline_mode<synchronous>, transform_indices = @transform_17, window_bounds = array<i64: 128, 3>}, {pipeline_mode = #tpu.pipeline_mode<synchronous>, transform_indices = @transform_18, window_bounds = array<i64: 1, 3>}, {transform_indices = @transform_19, window_bounds = array<i64: 1, 2, 3>}]} {
    %c0_i32 = arith.constant 0 : i32
    %0 = arith.cmpi eq, %arg1, %c0_i32 : i32
    %1 = arith.extui %0 : i1 to i32
    %c0_i32_0 = arith.constant 0 : i32
    %2 = arith.cmpi ne, %1, %c0_i32_0 : i32
    scf.if %2 {
      %c0_75 = arith.constant 0 : index
      %c0_76 = arith.constant 0 : index
      %c0_77 = arith.constant 0 : index
      %178 = vector.load %arg2[%c0_75, %c0_76, %c0_77] : memref<2x16x192xbf16, #tpu.memory_space<vmem>>, vector<2x16x192xbf16>
      %179 = vector.shape_cast %178 : vector<2x16x192xbf16> to vector<32x192xbf16>
      %c0_78 = arith.constant 0 : index
      %c0_79 = arith.constant 0 : index
      %180 = vector.load %arg3[%c0_78, %c0_79] : memref<192x128xbf16, #tpu.memory_space<vmem>>, vector<192x128xbf16>
      %cst_80 = arith.constant dense<0.000000e+00> : vector<32x128xf32>
      %181 = tpu.matmul %179, %180, %cst_80 {dimension_numbers = #tpu.dot_dimension_numbers<[1], [0], [0], [1], [0, 0, 1, 1], [], []>} : vector<32x192xbf16>, vector<192x128xbf16>, vector<32x128xf32> -> vector<32x128xf32>
      %c0_81 = arith.constant 0 : index
      %c0_82 = arith.constant 0 : index
      %182 = vector.load %arg4[%c0_81, %c0_82] : memref<1x128xf32, #tpu.memory_space<vmem>>, vector<1x128xf32>
      %183 = vector.broadcast %182 : vector<1x128xf32> to vector<32x128xf32>
      %184 = arith.addf %181, %183 : vector<32x128xf32>
      %c0_83 = arith.constant 0 : index
      %c0_84 = arith.constant 0 : index
      %185 = vector.load %arg22[%c0_83, %c0_84] : memref<32x128xf32, #tpu.memory_space<vmem>>, vector<32x128xf32>
      tpu.vector_store %arg22[%c0_83, %c0_84], %184 {strides = array<i32>} : memref<32x128xf32, #tpu.memory_space<vmem>>, vector<32x128xf32>,
    } else {
    }
    %c0 = arith.constant 0 : index
    %c0_1 = arith.constant 0 : index
    %3 = vector.load %arg22[%c0, %c0_1] : memref<32x128xf32, #tpu.memory_space<vmem>>, vector<32x128xf32>
    %c0_2 = arith.constant 0 : index
    %c0_3 = arith.constant 0 : index
    %c0_4 = arith.constant 0 : index
    %4 = vector.load %arg5[%c0_2, %c0_3, %c0_4] : memref<1x1x128xf32, #tpu.memory_space<vmem>>, vector<1x1x128xf32>
    %5 = vector.shape_cast %4 : vector<1x1x128xf32> to vector<1x128xf32>
    %c0_5 = arith.constant 0 : index
    %c0_6 = arith.constant 0 : index
    %c0_7 = arith.constant 0 : index
    %6 = vector.load %arg6[%c0_5, %c0_6, %c0_7] : memref<1x1x128xf32, #tpu.memory_space<vmem>>, vector<1x1x128xf32>
    %7 = vector.shape_cast %6 : vector<1x1x128xf32> to vector<1x128xf32>
    %cst = arith.constant dense<0.000000e+00> : vector<32xf32>
    %8 = vector.multi_reduction <add>, %3, %cst [1] : vector<32x128xf32> to vector<32xf32>
    %9 = vector.shape_cast %8 : vector<32xf32> to vector<32x1xf32>
    %cst_8 = arith.constant 1.280000e+02 : f32
    %10 = vector.broadcast %cst_8 : f32 to vector<32x1xf32>
    %11 = arith.divf %9, %10 : vector<32x1xf32>
    %12 = vector.broadcast %11 : vector<32x1xf32> to vector<32x128xf32>
    %13 = arith.subf %3, %12 : vector<32x128xf32>
    %14 = arith.mulf %13, %13 : vector<32x128xf32>
    %cst_9 = arith.constant dense<0.000000e+00> : vector<32xf32>
    %15 = vector.multi_reduction <add>, %14, %cst_9 [1] : vector<32x128xf32> to vector<32xf32>
    %16 = vector.shape_cast %15 : vector<32xf32> to vector<32x1xf32>
    %cst_10 = arith.constant 1.280000e+02 : f32
    %17 = vector.broadcast %cst_10 : f32 to vector<32x1xf32>
    %18 = arith.divf %16, %17 : vector<32x1xf32>
    %19 = vector.broadcast %11 : vector<32x1xf32> to vector<32x128xf32>
    %20 = arith.subf %3, %19 : vector<32x128xf32>
    %cst_11 = arith.constant 9.99999974E-6 : f32
    %21 = vector.broadcast %cst_11 : f32 to vector<32x1xf32>
    %22 = arith.addf %18, %21 : vector<32x1xf32>
    %23 = math.rsqrt %22 : vector<32x1xf32>
    %24 = vector.broadcast %23 : vector<32x1xf32> to vector<32x128xf32>
    %25 = arith.mulf %20, %24 : vector<32x128xf32>
    %26 = vector.broadcast %5 : vector<1x128xf32> to vector<32x128xf32>
    %27 = arith.mulf %25, %26 : vector<32x128xf32>
    %28 = vector.broadcast %7 : vector<1x128xf32> to vector<32x128xf32>
    %29 = arith.addf %27, %28 : vector<32x128xf32>
    %30 = arith.truncf %29 : vector<32x128xf32> to vector<32x128xbf16>
    %c0_12 = arith.constant 0 : index
    %c0_13 = arith.constant 0 : index
    %c0_14 = arith.constant 0 : index
    %31 = vector.load %arg7[%c0_12, %c0_13, %c0_14] : memref<1x128x384xbf16, #tpu.memory_space<vmem>>, vector<1x128x384xbf16>
    %32 = vector.shape_cast %31 : vector<1x128x384xbf16> to vector<128x384xbf16>
    %cst_15 = arith.constant dense<0.000000e+00> : vector<32x384xf32>
    %33 = tpu.matmul %30, %32, %cst_15 {dimension_numbers = #tpu.dot_dimension_numbers<[1], [0], [0], [1], [0, 0, 1, 1], [], []>} : vector<32x128xbf16>, vector<128x384xbf16>, vector<32x384xf32> -> vector<32x384xf32>
    %c0_16 = arith.constant 0 : index
    %c0_17 = arith.constant 0 : index
    %c0_18 = arith.constant 0 : index
    %34 = vector.load %arg8[%c0_16, %c0_17, %c0_18] : memref<1x1x384xf32, #tpu.memory_space<vmem>>, vector<1x1x384xf32>
    %35 = vector.shape_cast %34 : vector<1x1x384xf32> to vector<1x384xf32>
    %36 = vector.broadcast %35 : vector<1x384xf32> to vector<32x384xf32>
    %37 = arith.addf %33, %36 : vector<32x384xf32>
    %38 = arith.truncf %37 : vector<32x384xf32> to vector<32x384xbf16>
    %39 = vector.shape_cast %38 : vector<32x384xbf16> to vector<2x16x384xbf16>
    %40 = vector.extract_strided_slice %39 {offsets = [0, 0, 0], sizes = [2, 16, 32], strides = [1, 1, 1]} : vector<2x16x384xbf16> to vector<2x16x32xbf16>
    %41 = vector.extract_strided_slice %39 {offsets = [0, 0, 32], sizes = [2, 16, 32], strides = [1, 1, 1]} : vector<2x16x384xbf16> to vector<2x16x32xbf16>
    %42 = vector.extract_strided_slice %39 {offsets = [0, 0, 64], sizes = [2, 16, 32], strides = [1, 1, 1]} : vector<2x16x384xbf16> to vector<2x16x32xbf16>
    %43 = vector.extract_strided_slice %39 {offsets = [0, 0, 96], sizes = [2, 16, 32], strides = [1, 1, 1]} : vector<2x16x384xbf16> to vector<2x16x32xbf16>
    %44 = tpu.concatenate %40, %41, %42, %43 in 0 : vector<2x16x32xbf16>, vector<2x16x32xbf16>, vector<2x16x32xbf16>, vector<2x16x32xbf16> -> vector<8x16x32xbf16>
    %45 = vector.extract_strided_slice %39 {offsets = [0, 0, 128], sizes = [2, 16, 32], strides = [1, 1, 1]} : vector<2x16x384xbf16> to vector<2x16x32xbf16>
    %46 = vector.extract_strided_slice %39 {offsets = [0, 0, 160], sizes = [2, 16, 32], strides = [1, 1, 1]} : vector<2x16x384xbf16> to vector<2x16x32xbf16>
    %47 = vector.extract_strided_slice %39 {offsets = [0, 0, 192], sizes = [2, 16, 32], strides = [1, 1, 1]} : vector<2x16x384xbf16> to vector<2x16x32xbf16>
    %48 = vector.extract_strided_slice %39 {offsets = [0, 0, 224], sizes = [2, 16, 32], strides = [1, 1, 1]} : vector<2x16x384xbf16> to vector<2x16x32xbf16>
    %49 = tpu.concatenate %45, %46, %47, %48 in 0 : vector<2x16x32xbf16>, vector<2x16x32xbf16>, vector<2x16x32xbf16>, vector<2x16x32xbf16> -> vector<8x16x32xbf16>
    %50 = vector.extract_strided_slice %39 {offsets = [0, 0, 256], sizes = [2, 16, 32], strides = [1, 1, 1]} : vector<2x16x384xbf16> to vector<2x16x32xbf16>
    %51 = vector.extract_strided_slice %39 {offsets = [0, 0, 288], sizes = [2, 16, 32], strides = [1, 1, 1]} : vector<2x16x384xbf16> to vector<2x16x32xbf16>
    %52 = vector.extract_strided_slice %39 {offsets = [0, 0, 320], sizes = [2, 16, 32], strides = [1, 1, 1]} : vector<2x16x384xbf16> to vector<2x16x32xbf16>
    %53 = vector.extract_strided_slice %39 {offsets = [0, 0, 352], sizes = [2, 16, 32], strides = [1, 1, 1]} : vector<2x16x384xbf16> to vector<2x16x32xbf16>
    %54 = tpu.concatenate %50, %51, %52, %53 in 0 : vector<2x16x32xbf16>, vector<2x16x32xbf16>, vector<2x16x32xbf16>, vector<2x16x32xbf16> -> vector<8x16x32xbf16>
    "tpu.trace_start"() <{level = 10 : i32, message = "bqd,bkd->bqk"}> : () -> ()
    %cst_19 = arith.constant dense<0.000000e+00> : vector<8x16x16xf32>
    %55 = tpu.matmul %44, %49, %cst_19 {dimension_numbers = #tpu.dot_dimension_numbers<[2], [2], [1], [1], [0, 0, 0, 1, 1, 1], [0], [0]>} : vector<8x16x32xbf16>, vector<8x16x32xbf16>, vector<8x16x16xf32> -> vector<8x16x16xf32>
    "tpu.trace_stop"() : () -> ()
    %cst_20 = arith.constant 0.176776692 : f32
    %56 = vector.broadcast %cst_20 : f32 to vector<8x16x16xf32>
    %57 = arith.mulf %55, %56 : vector<8x16x16xf32>
    %cst_21 = arith.constant dense<0xFF800000> : vector<8x16xf32>
    %58 = vector.multi_reduction <maximumf>, %57, %cst_21 [2] : vector<8x16x16xf32> to vector<8x16xf32>
    %59 = vector.shape_cast %58 : vector<8x16xf32> to vector<8x16x1xf32>
    %60 = vector.broadcast %59 : vector<8x16x1xf32> to vector<8x16x16xf32>
    %61 = arith.subf %57, %60 : vector<8x16x16xf32>
    %62 = math.exp %61 : vector<8x16x16xf32>
    %cst_22 = arith.constant dense<0.000000e+00> : vector<8x16xf32>
    %63 = vector.multi_reduction <add>, %62, %cst_22 [2] : vector<8x16x16xf32> to vector<8x16xf32>
    %64 = vector.shape_cast %63 : vector<8x16xf32> to vector<8x16x1xf32>
    %65 = tpu.reciprocal %64 {approx = true} : vector<8x16x1xf32> -> vector<8x16x1xf32>
    %66 = vector.broadcast %65 : vector<8x16x1xf32> to vector<8x16x16xf32>
    %67 = arith.mulf %62, %66 : vector<8x16x16xf32>
    %68 = arith.truncf %67 : vector<8x16x16xf32> to vector<8x16x16xbf16>
    "tpu.trace_start"() <{level = 10 : i32, message = "bqk,bkd->bqd"}> : () -> ()
    %cst_23 = arith.constant dense<0.000000e+00> : vector<8x16x32xf32>
    %69 = tpu.matmul %68, %54, %cst_23 {dimension_numbers = #tpu.dot_dimension_numbers<[2], [1], [1], [2], [0, 0, 0, 1, 1, 2], [0], [0]>} : vector<8x16x16xbf16>, vector<8x16x32xbf16>, vector<8x16x32xf32> -> vector<8x16x32xf32>
    "tpu.trace_stop"() : () -> ()
    %70 = vector.shape_cast %69 : vector<8x16x32xf32> to vector<4x2x16x32xf32>
    %71 = vector.extract_strided_slice %70 {offsets = [0, 0, 0, 0], sizes = [1, 2, 16, 32], strides = [1, 1, 1, 1]} : vector<4x2x16x32xf32> to vector<1x2x16x32xf32>
    %72 = vector.shape_cast %71 : vector<1x2x16x32xf32> to vector<2x16x32xf32>
    %73 = vector.extract_strided_slice %70 {offsets = [1, 0, 0, 0], sizes = [1, 2, 16, 32], strides = [1, 1, 1, 1]} : vector<4x2x16x32xf32> to vector<1x2x16x32xf32>
    %74 = vector.shape_cast %73 : vector<1x2x16x32xf32> to vector<2x16x32xf32>
    %75 = vector.extract_strided_slice %70 {offsets = [2, 0, 0, 0], sizes = [1, 2, 16, 32], strides = [1, 1, 1, 1]} : vector<4x2x16x32xf32> to vector<1x2x16x32xf32>
    %76 = vector.shape_cast %75 : vector<1x2x16x32xf32> to vector<2x16x32xf32>
    %77 = vector.extract_strided_slice %70 {offsets = [3, 0, 0, 0], sizes = [1, 2, 16, 32], strides = [1, 1, 1, 1]} : vector<4x2x16x32xf32> to vector<1x2x16x32xf32>
    %78 = vector.shape_cast %77 : vector<1x2x16x32xf32> to vector<2x16x32xf32>
    %79 = tpu.concatenate %72, %74, %76, %78 in 2 : vector<2x16x32xf32>, vector<2x16x32xf32>, vector<2x16x32xf32>, vector<2x16x32xf32> -> vector<2x16x128xf32>
    %80 = vector.shape_cast %79 : vector<2x16x128xf32> to vector<32x128xf32>
    %81 = arith.truncf %80 : vector<32x128xf32> to vector<32x128xbf16>
    %c0_24 = arith.constant 0 : index
    %c0_25 = arith.constant 0 : index
    %c0_26 = arith.constant 0 : index
    %82 = vector.load %arg9[%c0_24, %c0_25, %c0_26] : memref<1x128x128xbf16, #tpu.memory_space<vmem>>, vector<1x128x128xbf16>
    %83 = vector.shape_cast %82 : vector<1x128x128xbf16> to vector<128x128xbf16>
    %cst_27 = arith.constant dense<0.000000e+00> : vector<32x128xf32>
    %84 = tpu.matmul %81, %83, %cst_27 {dimension_numbers = #tpu.dot_dimension_numbers<[1], [0], [0], [1], [0, 0, 1, 1], [], []>} : vector<32x128xbf16>, vector<128x128xbf16>, vector<32x128xf32> -> vector<32x128xf32>
    %c0_28 = arith.constant 0 : index
    %c0_29 = arith.constant 0 : index
    %c0_30 = arith.constant 0 : index
    %85 = vector.load %arg10[%c0_28, %c0_29, %c0_30] : memref<1x1x128xf32, #tpu.memory_space<vmem>>, vector<1x1x128xf32>
    %86 = vector.shape_cast %85 : vector<1x1x128xf32> to vector<1x128xf32>
    %87 = vector.broadcast %86 : vector<1x128xf32> to vector<32x128xf32>
    %88 = arith.addf %84, %87 : vector<32x128xf32>
    %89 = arith.addf %3, %88 : vector<32x128xf32>
    %c0_31 = arith.constant 0 : index
    %c0_32 = arith.constant 0 : index
    %c0_33 = arith.constant 0 : index
    %90 = vector.load %arg11[%c0_31, %c0_32, %c0_33] : memref<1x1x128xf32, #tpu.memory_space<vmem>>, vector<1x1x128xf32>
    %91 = vector.shape_cast %90 : vector<1x1x128xf32> to vector<1x128xf32>
    %c0_34 = arith.constant 0 : index
    %c0_35 = arith.constant 0 : index
    %c0_36 = arith.constant 0 : index
    %92 = vector.load %arg12[%c0_34, %c0_35, %c0_36] : memref<1x1x128xf32, #tpu.memory_space<vmem>>, vector<1x1x128xf32>
    %93 = vector.shape_cast %92 : vector<1x1x128xf32> to vector<1x128xf32>
    %cst_37 = arith.constant dense<0.000000e+00> : vector<32xf32>
    %94 = vector.multi_reduction <add>, %89, %cst_37 [1] : vector<32x128xf32> to vector<32xf32>
    %95 = vector.shape_cast %94 : vector<32xf32> to vector<32x1xf32>
    %cst_38 = arith.constant 1.280000e+02 : f32
    %96 = vector.broadcast %cst_38 : f32 to vector<32x1xf32>
    %97 = arith.divf %95, %96 : vector<32x1xf32>
    %98 = vector.broadcast %97 : vector<32x1xf32> to vector<32x128xf32>
    %99 = arith.subf %89, %98 : vector<32x128xf32>
    %100 = arith.mulf %99, %99 : vector<32x128xf32>
    %cst_39 = arith.constant dense<0.000000e+00> : vector<32xf32>
    %101 = vector.multi_reduction <add>, %100, %cst_39 [1] : vector<32x128xf32> to vector<32xf32>
    %102 = vector.shape_cast %101 : vector<32xf32> to vector<32x1xf32>
    %cst_40 = arith.constant 1.280000e+02 : f32
    %103 = vector.broadcast %cst_40 : f32 to vector<32x1xf32>
    %104 = arith.divf %102, %103 : vector<32x1xf32>
    %105 = vector.broadcast %97 : vector<32x1xf32> to vector<32x128xf32>
    %106 = arith.subf %89, %105 : vector<32x128xf32>
    %cst_41 = arith.constant 9.99999974E-6 : f32
    %107 = vector.broadcast %cst_41 : f32 to vector<32x1xf32>
    %108 = arith.addf %104, %107 : vector<32x1xf32>
    %109 = math.rsqrt %108 : vector<32x1xf32>
    %110 = vector.broadcast %109 : vector<32x1xf32> to vector<32x128xf32>
    %111 = arith.mulf %106, %110 : vector<32x128xf32>
    %112 = vector.broadcast %91 : vector<1x128xf32> to vector<32x128xf32>
    %113 = arith.mulf %111, %112 : vector<32x128xf32>
    %114 = vector.broadcast %93 : vector<1x128xf32> to vector<32x128xf32>
    %115 = arith.addf %113, %114 : vector<32x128xf32>
    %116 = arith.truncf %115 : vector<32x128xf32> to vector<32x128xbf16>
    %c0_42 = arith.constant 0 : index
    %c0_43 = arith.constant 0 : index
    %c0_44 = arith.constant 0 : index
    %117 = vector.load %arg13[%c0_42, %c0_43, %c0_44] : memref<1x128x256xbf16, #tpu.memory_space<vmem>>, vector<1x128x256xbf16>
    %118 = vector.shape_cast %117 : vector<1x128x256xbf16> to vector<128x256xbf16>
    %cst_45 = arith.constant dense<0.000000e+00> : vector<32x256xf32>
    %119 = tpu.matmul %116, %118, %cst_45 {dimension_numbers = #tpu.dot_dimension_numbers<[1], [0], [0], [1], [0, 0, 1, 1], [], []>} : vector<32x128xbf16>, vector<128x256xbf16>, vector<32x256xf32> -> vector<32x256xf32>
    %c0_46 = arith.constant 0 : index
    %c0_47 = arith.constant 0 : index
    %c0_48 = arith.constant 0 : index
    %120 = vector.load %arg14[%c0_46, %c0_47, %c0_48] : memref<1x1x256xf32, #tpu.memory_space<vmem>>, vector<1x1x256xf32>
    %121 = vector.shape_cast %120 : vector<1x1x256xf32> to vector<1x256xf32>
    %122 = vector.broadcast %121 : vector<1x256xf32> to vector<32x256xf32>
    %123 = arith.addf %119, %122 : vector<32x256xf32>
    %cst_49 = arith.constant 5.000000e-01 : f32
    %124 = vector.broadcast %cst_49 : f32 to vector<32x256xf32>
    %125 = arith.mulf %124, %123 : vector<32x256xf32>
    %cst_50 = arith.constant 0.707106769 : f32
    %126 = vector.broadcast %cst_50 : f32 to vector<32x256xf32>
    %127 = arith.mulf %123, %126 : vector<32x256xf32>
    %cst_51 = arith.constant 0.000000e+00 : f32
    %128 = vector.broadcast %cst_51 : f32 to vector<32x256xf32>
    %129 = arith.cmpf oge, %127, %128 : vector<32x256xf32>
    %cst_52 = arith.constant 1.000000e+00 : f32
    %cst_53 = arith.constant -1.000000e+00 : f32
    %130 = vector.broadcast %cst_52 : f32 to vector<32x256xf32>
    %131 = vector.broadcast %cst_53 : f32 to vector<32x256xf32>
    %132 = arith.select %129, %130, %131 : vector<32x256xi1>, vector<32x256xf32>
    %133 = math.absf %127 : vector<32x256xf32>
    %cst_54 = arith.constant 0.327591091 : f32
    %134 = vector.broadcast %cst_54 : f32 to vector<32x256xf32>
    %135 = arith.mulf %134, %133 : vector<32x256xf32>
    %cst_55 = arith.constant 1.000000e+00 : f32
    %136 = vector.broadcast %cst_55 : f32 to vector<32x256xf32>
    %137 = arith.addf %136, %135 : vector<32x256xf32>
    %cst_56 = arith.constant 1.000000e+00 : f32
    %138 = vector.broadcast %cst_56 : f32 to vector<32x256xf32>
    %139 = arith.divf %138, %137 : vector<32x256xf32>
    %cst_57 = arith.constant 1.06140542 : f32
    %140 = vector.broadcast %cst_57 : f32 to vector<32x256xf32>
    %141 = arith.mulf %140, %139 : vector<32x256xf32>
    %cst_58 = arith.constant -1.45315206 : f32
    %142 = vector.broadcast %cst_58 : f32 to vector<32x256xf32>
    %143 = arith.addf %141, %142 : vector<32x256xf32>
    %144 = arith.mulf %143, %139 : vector<32x256xf32>
    %cst_59 = arith.constant 1.42141378 : f32
    %145 = vector.broadcast %cst_59 : f32 to vector<32x256xf32>
    %146 = arith.addf %144, %145 : vector<32x256xf32>
    %147 = arith.mulf %146, %139 : vector<32x256xf32>
    %cst_60 = arith.constant -0.284496725 : f32
    %148 = vector.broadcast %cst_60 : f32 to vector<32x256xf32>
    %149 = arith.addf %147, %148 : vector<32x256xf32>
    %150 = arith.mulf %149, %139 : vector<32x256xf32>
    %cst_61 = arith.constant 0.254829586 : f32
    %151 = vector.broadcast %cst_61 : f32 to vector<32x256xf32>
    %152 = arith.addf %150, %151 : vector<32x256xf32>
    %153 = arith.mulf %152, %139 : vector<32x256xf32>
    %cst_62 = arith.constant 0.000000e+00 : f32
    %154 = vector.broadcast %cst_62 : f32 to vector<32x256xf32>
    %155 = arith.subf %154, %133 : vector<32x256xf32>
    %156 = arith.mulf %155, %133 : vector<32x256xf32>
    %157 = math.exp %156 : vector<32x256xf32>
    %158 = arith.mulf %153, %157 : vector<32x256xf32>
    %cst_63 = arith.constant 1.000000e+00 : f32
    %159 = vector.broadcast %cst_63 : f32 to vector<32x256xf32>
    %160 = arith.subf %159, %158 : vector<32x256xf32>
    %161 = arith.mulf %132, %160 : vector<32x256xf32>
    %cst_64 = arith.constant 1.000000e+00 : f32
    %162 = vector.broadcast %cst_64 : f32 to vector<32x256xf32>
    %163 = arith.addf %162, %161 : vector<32x256xf32>
    %164 = arith.mulf %125, %163 : vector<32x256xf32>
    %165 = arith.truncf %164 : vector<32x256xf32> to vector<32x256xbf16>
    %c0_65 = arith.constant 0 : index
    %c0_66 = arith.constant 0 : index
    %c0_67 = arith.constant 0 : index
    %166 = vector.load %arg15[%c0_65, %c0_66, %c0_67] : memref<1x256x128xbf16, #tpu.memory_space<vmem>>, vector<1x256x128xbf16>
    %167 = vector.shape_cast %166 : vector<1x256x128xbf16> to vector<256x128xbf16>
    %cst_68 = arith.constant dense<0.000000e+00> : vector<32x128xf32>
    %168 = tpu.matmul %165, %167, %cst_68 {dimension_numbers = #tpu.dot_dimension_numbers<[1], [0], [0], [1], [0, 0, 1, 1], [], []>} : vector<32x256xbf16>, vector<256x128xbf16>, vector<32x128xf32> -> vector<32x128xf32>
    %c0_69 = arith.constant 0 : index
    %c0_70 = arith.constant 0 : index
    %c0_71 = arith.constant 0 : index
    %169 = vector.load %arg16[%c0_69, %c0_70, %c0_71] : memref<1x1x128xf32, #tpu.memory_space<vmem>>, vector<1x1x128xf32>
    %170 = vector.shape_cast %169 : vector<1x1x128xf32> to vector<1x128xf32>
    %171 = vector.broadcast %170 : vector<1x128xf32> to vector<32x128xf32>
    %172 = arith.addf %168, %171 : vector<32x128xf32>
    %173 = arith.addf %89, %172 : vector<32x128xf32>
    %c0_72 = arith.constant 0 : index
    %c0_73 = arith.constant 0 : index
    %174 = vector.load %arg22[%c0_72, %c0_73] : memref<32x128xf32, #tpu.memory_space<vmem>>, vector<32x128xf32>
    tpu.vector_store %arg22[%c0_72, %c0_73], %173 {strides = array<i32>} : memref<32x128xf32, #tpu.memory_space<vmem>>, vector<32x128xf32>,
    %c1_i32 = arith.constant 1 : i32
    %175 = arith.cmpi eq, %arg1, %c1_i32 : i32
    %176 = arith.extui %175 : i1 to i32
    %c0_i32_74 = arith.constant 0 : i32
    %177 = arith.cmpi ne, %176, %c0_i32_74 : i32
    scf.if %177 {
      %c0_75 = arith.constant 0 : index
      %c0_76 = arith.constant 0 : index
      %178 = vector.load %arg22[%c0_75, %c0_76] : memref<32x128xf32, #tpu.memory_space<vmem>>, vector<1x128xf32>
      %c16 = arith.constant 16 : index
      %c0_77 = arith.constant 0 : index
      %179 = vector.load %arg22[%c16, %c0_77] : memref<32x128xf32, #tpu.memory_space<vmem>>, vector<1x128xf32>
      %180 = tpu.concatenate %178, %179 in 0 : vector<1x128xf32>, vector<1x128xf32> -> vector<2x128xf32>
      %c0_78 = arith.constant 0 : index
      %c0_79 = arith.constant 0 : index
      %181 = vector.load %arg17[%c0_78, %c0_79] : memref<1x128xf32, #tpu.memory_space<vmem>>, vector<1x128xf32>
      %c0_80 = arith.constant 0 : index
      %c0_81 = arith.constant 0 : index
      %182 = vector.load %arg18[%c0_80, %c0_81] : memref<1x128xf32, #tpu.memory_space<vmem>>, vector<1x128xf32>
      %cst_82 = arith.constant dense<0.000000e+00> : vector<2xf32>
      %183 = vector.multi_reduction <add>, %180, %cst_82 [1] : vector<2x128xf32> to vector<2xf32>
      %184 = vector.shape_cast %183 : vector<2xf32> to vector<2x1xf32>
      %cst_83 = arith.constant 1.280000e+02 : f32
      %185 = vector.broadcast %cst_83 : f32 to vector<2x1xf32>
      %186 = arith.divf %184, %185 : vector<2x1xf32>
      %187 = vector.broadcast %186 : vector<2x1xf32> to vector<2x128xf32>
      %188 = arith.subf %180, %187 : vector<2x128xf32>
      %189 = arith.mulf %188, %188 : vector<2x128xf32>
      %cst_84 = arith.constant dense<0.000000e+00> : vector<2xf32>
      %190 = vector.multi_reduction <add>, %189, %cst_84 [1] : vector<2x128xf32> to vector<2xf32>
      %191 = vector.shape_cast %190 : vector<2xf32> to vector<2x1xf32>
      %cst_85 = arith.constant 1.280000e+02 : f32
      %192 = vector.broadcast %cst_85 : f32 to vector<2x1xf32>
      %193 = arith.divf %191, %192 : vector<2x1xf32>
      %194 = vector.broadcast %186 : vector<2x1xf32> to vector<2x128xf32>
      %195 = arith.subf %180, %194 : vector<2x128xf32>
      %cst_86 = arith.constant 9.99999974E-6 : f32
      %196 = vector.broadcast %cst_86 : f32 to vector<2x1xf32>
      %197 = arith.addf %193, %196 : vector<2x1xf32>
      %198 = math.rsqrt %197 : vector<2x1xf32>
      %199 = vector.broadcast %198 : vector<2x1xf32> to vector<2x128xf32>
      %200 = arith.mulf %195, %199 : vector<2x128xf32>
      %201 = vector.broadcast %181 : vector<1x128xf32> to vector<2x128xf32>
      %202 = arith.mulf %200, %201 : vector<2x128xf32>
      %203 = vector.broadcast %182 : vector<1x128xf32> to vector<2x128xf32>
      %204 = arith.addf %202, %203 : vector<2x128xf32>
      %c0_87 = arith.constant 0 : index
      %c0_88 = arith.constant 0 : index
      %205 = vector.load %arg19[%c0_87, %c0_88] : memref<128x3xf32, #tpu.memory_space<vmem>>, vector<128x3xf32>
      %cst_89 = arith.constant dense<0.000000e+00> : vector<2x3xf32>
      %206 = tpu.matmul %204, %205, %cst_89 {dimension_numbers = #tpu.dot_dimension_numbers<[1], [0], [0], [1], [0, 0, 1, 1], [], []>} : vector<2x128xf32>, vector<128x3xf32>, vector<2x3xf32> -> vector<2x3xf32>
      %c0_90 = arith.constant 0 : index
      %c0_91 = arith.constant 0 : index
      %207 = vector.load %arg20[%c0_90, %c0_91] : memref<1x3xf32, #tpu.memory_space<vmem>>, vector<1x3xf32>
      %208 = vector.broadcast %207 : vector<1x3xf32> to vector<2x3xf32>
      %209 = arith.addf %206, %208 : vector<2x3xf32>
      %c0_92 = arith.constant 0 : index
      %c0_93 = arith.constant 0 : index
      %c0_94 = arith.constant 0 : index
      %210 = vector.load %arg21[%c0_92, %c0_93, %c0_94] : memref<1x2x3xf32, #tpu.memory_space<vmem>>, vector<1x2x3xf32>
      %211 = vector.shape_cast %210 : vector<1x2x3xf32> to vector<2x3xf32>
      %212 = vector.shape_cast %209 : vector<2x3xf32> to vector<1x2x3xf32>
      tpu.vector_store %arg21[%c0_92, %c0_93, %c0_94], %212 {strides = array<i32>} : memref<1x2x3xf32, #tpu.memory_space<vmem>>, vector<1x2x3xf32>,
    } else {
    }
    return
  }
  func.func @transform_0(%arg0: i32, %arg1: i32) -> (i32, i32, i32) {
    %c0_i32 = arith.constant 0 : i32
    %c0_i32_0 = arith.constant 0 : i32
    %c0_i32_1 = arith.constant 0 : i32
    return %arg0, %c0_i32, %c0_i32_0 : i32, i32, i32
  }
  func.func @transform_1(%arg0: i32, %arg1: i32) -> (i32, i32) {
    %c0_i32 = arith.constant 0 : i32
    %c0_i32_0 = arith.constant 0 : i32
    %c0_i32_1 = arith.constant 0 : i32
    return %c0_i32, %c0_i32_0 : i32, i32
  }
  func.func @transform_2(%arg0: i32, %arg1: i32) -> (i32, i32) {
    %c0_i32 = arith.constant 0 : i32
    %c0_i32_0 = arith.constant 0 : i32
    %c0_i32_1 = arith.constant 0 : i32
    return %c0_i32, %c0_i32_0 : i32, i32
  }
  func.func @transform_3(%arg0: i32, %arg1: i32) -> (i32, i32, i32) {
    %c0_i32 = arith.constant 0 : i32
    %c0_i32_0 = arith.constant 0 : i32
    %c0_i32_1 = arith.constant 0 : i32
    return %arg1, %c0_i32, %c0_i32_0 : i32, i32, i32
  }
  func.func @transform_4(%arg0: i32, %arg1: i32) -> (i32, i32, i32) {
    %c0_i32 = arith.constant 0 : i32
    %c0_i32_0 = arith.constant 0 : i32
    %c0_i32_1 = arith.constant 0 : i32
    return %arg1, %c0_i32, %c0_i32_0 : i32, i32, i32
  }
  func.func @transform_5(%arg0: i32, %arg1: i32) -> (i32, i32, i32) {
    %c0_i32 = arith.constant 0 : i32
    %c0_i32_0 = arith.constant 0 : i32
    %c0_i32_1 = arith.constant 0 : i32
    return %arg1, %c0_i32, %c0_i32_0 : i32, i32, i32
  }
  func.func @transform_6(%arg0: i32, %arg1: i32) -> (i32, i32, i32) {
    %c0_i32 = arith.constant 0 : i32
    %c0_i32_0 = arith.constant 0 : i32
    %c0_i32_1 = arith.constant 0 : i32
    return %arg1, %c0_i32, %c0_i32_0 : i32, i32, i32
  }
  func.func @transform_7(%arg0: i32, %arg1: i32) -> (i32, i32, i32) {
    %c0_i32 = arith.constant 0 : i32
    %c0_i32_0 = arith.constant 0 : i32
    %c0_i32_1 = arith.constant 0 : i32
    return %arg1, %c0_i32, %c0_i32_0 : i32, i32, i32
  }
  func.func @transform_8(%arg0: i32, %arg1: i32) -> (i32, i32, i32) {
    %c0_i32 = arith.constant 0 : i32
    %c0_i32_0 = arith.constant 0 : i32
    %c0_i32_1 = arith.constant 0 : i32
    return %arg1, %c0_i32, %c0_i32_0 : i32, i32, i32
  }
  func.func @transform_9(%arg0: i32, %arg1: i32) -> (i32, i32, i32) {
    %c0_i32 = arith.constant 0 : i32
    %c0_i32_0 = arith.constant 0 : i32
    %c0_i32_1 = arith.constant 0 : i32
    return %arg1, %c0_i32, %c0_i32_0 : i32, i32, i32
  }
  func.func @transform_10(%arg0: i32, %arg1: i32) -> (i32, i32, i32) {
    %c0_i32 = arith.constant 0 : i32
    %c0_i32_0 = arith.constant 0 : i32
    %c0_i32_1 = arith.constant 0 : i32
    return %arg1, %c0_i32, %c0_i32_0 : i32, i32, i32
  }
  func.func @transform_11(%arg0: i32, %arg1: i32) -> (i32, i32, i32) {
    %c0_i32 = arith.constant 0 : i32
    %c0_i32_0 = arith.constant 0 : i32
    %c0_i32_1 = arith.constant 0 : i32
    return %arg1, %c0_i32, %c0_i32_0 : i32, i32, i32
  }
  func.func @transform_12(%arg0: i32, %arg1: i32) -> (i32, i32, i32) {
    %c0_i32 = arith.constant 0 : i32
    %c0_i32_0 = arith.constant 0 : i32
    %c0_i32_1 = arith.constant 0 : i32
    return %arg1, %c0_i32, %c0_i32_0 : i32, i32, i32
  }
  func.func @transform_13(%arg0: i32, %arg1: i32) -> (i32, i32, i32) {
    %c0_i32 = arith.constant 0 : i32
    %c0_i32_0 = arith.constant 0 : i32
    %c0_i32_1 = arith.constant 0 : i32
    return %arg1, %c0_i32, %c0_i32_0 : i32, i32, i32
  }
  func.func @transform_14(%arg0: i32, %arg1: i32) -> (i32, i32, i32) {
    %c0_i32 = arith.constant 0 : i32
    %c0_i32_0 = arith.constant 0 : i32
    %c0_i32_1 = arith.constant 0 : i32
    return %arg1, %c0_i32, %c0_i32_0 : i32, i32, i32
  }
  func.func @transform_15(%arg0: i32, %arg1: i32) -> (i32, i32) {
    %c0_i32 = arith.constant 0 : i32
    %c0_i32_0 = arith.constant 0 : i32
    %c0_i32_1 = arith.constant 0 : i32
    return %c0_i32, %c0_i32_0 : i32, i32
  }
  func.func @transform_16(%arg0: i32, %arg1: i32) -> (i32, i32) {
    %c0_i32 = arith.constant 0 : i32
    %c0_i32_0 = arith.constant 0 : i32
    %c0_i32_1 = arith.constant 0 : i32
    return %c0_i32, %c0_i32_0 : i32, i32
  }
  func.func @transform_17(%arg0: i32, %arg1: i32) -> (i32, i32) {
    %c0_i32 = arith.constant 0 : i32
    %c0_i32_0 = arith.constant 0 : i32
    %c0_i32_1 = arith.constant 0 : i32
    return %c0_i32, %c0_i32_0 : i32, i32
  }
  func.func @transform_18(%arg0: i32, %arg1: i32) -> (i32, i32) {
    %c0_i32 = arith.constant 0 : i32
    %c0_i32_0 = arith.constant 0 : i32
    %c0_i32_1 = arith.constant 0 : i32
    return %c0_i32, %c0_i32_0 : i32, i32
  }
  func.func @transform_19(%arg0: i32, %arg1: i32) -> (i32, i32, i32) {
    %c0_i32 = arith.constant 0 : i32
    %c0_i32_0 = arith.constant 0 : i32
    %c0_i32_1 = arith.constant 0 : i32
    return %arg0, %c0_i32, %c0_i32_0 : i32, i32, i32
  }
}

</mosaic_0001>

<bundles_post_ra>
// kernel: vit_forward.1
= control target key start
LH: loop header
LB: loop body
LE: loop exit
PB: predicated region body
PF: predicated region fallthrough
CT: control target
= control target key end

     0   :  { %s5404_s0 = inlined_call_operand.vmem [shape: bf16[4,16,192], index: 0, kind: input, shape index: {}]   ;;  %s5405_s1 = inlined_call_operand.vmem [shape: bf16[192,128], index: 1, kind: input, shape index: {}]   ;;  %s5406_s2 = inlined_call_operand.vmem [shape: f32[1,128], index: 2, kind: input, shape index: {}]   ;;  %s5407_s3 = inlined_call_operand.vmem [shape: f32[2,1,128], index: 3, kind: input, shape index: {}]   ;;  %s5408_s4 = inlined_call_operand.vmem [shape: f32[2,1,128], index: 4, kind: input, shape index: {}]   ;;  %s5409_s5 = inlined_call_operand.vmem [shape: bf16[2,128,384], index: 5, kind: input, shape index: {}]   ;;  %s5410_s6 = inlined_call_operand.vmem [shape: f32[2,1,384], index: 6, kind: input, shape index: {}]   ;;  %s5411_s7 = inlined_call_operand.vmem [shape: bf16[2,128,128], index: 7, kind: input, shape index: {}]   ;;  %s5412_s8 = inlined_call_operand.vmem [shape: f32[2,1,128], index: 8, kind: input, shape index: {}]   ;;  %s5413_s9 = inlined_call_operand.vmem [shape: f32[2,1,128], index: 9, kind: input, shape index: {}]   ;;  %s5414_s10 = inlined_call_operand.vmem [shape: f32[2,1,128], index: 10, kind: input, shape index: {}]   ;;  %s5415_s11 = inlined_call_operand.vmem [shape: bf16[2,128,256], index: 11, kind: input, shape index: {}]   ;;  %s5416_s12 = inlined_call_operand.vmem [shape: f32[2,1,256], index: 12, kind: input, shape index: {}]   ;;  %s5417_s13 = inlined_call_operand.vmem [shape: bf16[2,256,128], index: 13, kind: input, shape index: {}]   ;;  %s5418_s14 = inlined_call_operand.vmem [shape: f32[2,1,128], index: 14, kind: input, shape index: {}]   ;;  %s5419_s15 = inlined_call_operand.vmem [shape: f32[1,128], index: 15, kind: input, shape index: {}]   ;;  %s5420_s16 = inlined_call_operand.vmem [shape: f32[1,128], index: 16, kind: input, shape index: {}]   ;;  %s5421_s17 = inlined_call_operand.vmem [shape: f32[128,3], index: 17, kind: input, shape index: {}]   ;;  %s5422_s18 = inlined_call_operand.vmem [shape: f32[1,3], index: 18, kind: input, shape index: {}]   ;;  %s5423_s19 = inlined_call_operand.hbm [shape: f32[2,2,3], index: 19, kind: output, shape index: {}]  }
   0x1   :  { %5441 = sst [smem:[#allocation19_spill]] %s5404_s0 }
   0x2   :  { %5442 = sst [smem:[#allocation20_spill]] %s5405_s1 }
   0x3   :  { %5443 = sst [smem:[#allocation21_spill]] %s5406_s2 }
   0x4   :  { %5444 = sst [smem:[#allocation22_spill]] %s5407_s3 }
   0x5   :  { %5445 = sst [smem:[#allocation23_spill]] %s5409_s5 }
   0x6   :  { %5446 = sst [smem:[#allocation24_spill]] %s5410_s6 }
   0x7   :  { %5447 = sst [smem:[#allocation25_spill]] %s5411_s7 }
   0x8   :  { %5448 = sst [smem:[#allocation26_spill]] %s5419_s15 }
   0x9   :  { %5449 = sst [smem:[#allocation27_spill]] %s5420_s16 }
   0xa   :  { %5450 = sst [smem:[#allocation28_spill]] %s5421_s17 }
   0xb   :  { %5451 = sst [smem:[#allocation29_spill]] %s5422_s18 }
   0xc   :  { %5452 = sst [smem:[#allocation30_spill]] %s5423_s19 }
   0xd   :  { %24 = vsyncpa [#allocation4], 0 }
   0xe   :  { %26 = vsyncpa [#allocation4 + $0x1], 0  ;;  %s4506_s0 = smov 0   ;;  %s4508_s30 = smov 0  }
   0xf   :  { %s4510_s20 = smov 0   ;;  %s4512_s21 = smov 0  }
  0x10   :  { %s4514_s1 = smov 0   ;;  %s4516_s22 = smov 0  }
  0x11   :  { %s4518_s2 = smov 0   ;;  %s4520_s23 = smov 0  }
  0x12 LB: > { %5453 = sst [smem:[#allocation6_spill]] %s4364_s0  ;;  %s3517_s24 = sadd.s32 4294967295, %s4392_s23   ;;  %s4392_s23 = sphi %s4520_s23, %s32_s23   ;;  %s4388_s2 = sphi %s4518_s2, %s5503_s2   ;;  %s4384_s22 = sphi %s4516_s22, %s5502_s22   ;;  %s4380_s1 = sphi %s4514_s1, %s5501_s1   ;;  %s4376_s21 = sphi %s4512_s21, %s5500_s21   ;;  %s4372_s20 = sphi %s4510_s20, %s5499_s20   ;;  %s4368_s30 = sphi %s4508_s30, %s5498_s30   ;;  %s4364_s0 = sphi %s4506_s0, %s5497_s0  }
  0x13   : > { %5454 = sst [smem:[#allocation7_spill]] %s4368_s30  ;;  %s3518_s25 = sadd.s32 4294967294, %s4392_s23  }
  0x14   : > { %5455 = sst [smem:[#allocation8_spill]] %s4372_s20  ;;  %s41_s3 = sadd.s32 1, %s4384_s22 }
  0x15   : > { %5456 = sst [smem:[#allocation9_spill]] %s4376_s21  ;;  %p42_p0 = scmp.ge.s32.totalorder %s41_s3, 2 }
  0x16   : > { %5457 = sst [smem:[#allocation10_spill]] %s4380_s1  ;;  %s44_s26 = sadd.s32 1, %s4388_s2 }
  0x17   : > { %5458 = sst [smem:[#allocation11_spill]] %s4384_s22  ;;  %p525_p1 = scmp.ne.s32.totalorder %s4372_s20, %s4368_s30 }
  0x18   : > { %5459 = sst [smem:[#allocation12_spill]] %s4388_s2  ;;  %p526_p2 = scmp.eq.s32.totalorder %s3517_s24, 3 }
  0x19   : > { %5460 = sst [smem:[#allocation13_spill]] %s4392_s23  ;;  %s5505_s3 = smov (%p42_p0, %s41_s3), 0 }
  0x1a   : > { %5461 = sst [smem:[#allocation14_spill]] %s5505_s3  ;;  %s5507_s26 = smov (!%p42_p0, %s44_s26), %s4388_s2 }
  0x1b   : > { %p4555_p3 = por %p526_p2, %p525_p1  ;;  %p531_p4 = scmp.ne.s32.totalorder %s4368_s30, %s4364_s0 }
  0x1c   : > { %p46_p5 = scmp.ge.s32.totalorder %s5507_s26, 2  ;;  %p532_p6 = scmp.eq.s32.totalorder %s3518_s25, 3 }
  0x1d   : > { %s5462_s27 = scalar_select %p4555_p3, 1, 0 }
  0x1e   : > { %p3521_p7 = scmp.ge.s32.totalorder %s4392_s23, 1  ;;  %p660_p8 = scmp.lt.s32.totalorder %s4392_s23, 5 }
  0x1f   : > { %5463 = sst [smem:[#allocation15_spill]] %s5462_s27  ;;  %s5509_s26 = smov (%p46_p5, %s5507_s26), 0 }
  0x20   : > { %5464 = sst [smem:[#allocation16_spill]] %s5509_s26  ;;  %p4565_p9 = por %p532_p6, %p531_p4 }
  0x21   : > { %p661_p10 = pnand %p3521_p7, %p660_p8  ;;  %s512_s29 = ssub.s32 %s4388_s2, %s5509_s26 }
  0x22   : > { %s5465_s28 = scalar_select %p4565_p9, 1, 0 }
  0x23   : > { %s515_s24 = sadd.s32 1, %s4372_s20  ;;  %p513_p11 = scmp.eq.s32.totalorder %s512_s29, 0 }
  0x24   : > { %5466 = sst [smem:[#allocation17_spill]] %s5465_s28  ;;  %664 = sbr.rel (%p661_p10) target bundleno = 3536 (0xdd0), region = 96 }
  0x25   : > { %s4573_s3 = scalar_select %p513_p11, %s4372_s20, %s515_s24  }
  0x26   : > { %s5429_s25 = sand.u32 (!%p661_p10), 1, %s4368_s30   ;;  %s3523_s22 = sshll.u32 (!%p661_p10), %s4380_s1, 1 }
  0x27   : > { %5467 = sst [smem:[#allocation18_spill]] %s4573_s3  ;;  %s4579_s0 = sshll.u32 (!%p661_p10), %s5429_s25, 1 }
  0x28   : > { %p764_p12 = scmp.lt.s32.totalorder (!%p661_p10), %s3523_s22, 3  ;;  %p770_p13 = scmp.lt.s32.totalorder (!%p661_p10), %s4376_s21, 1 }
  0x29   : > { %s5468_s25 = sld [smem:[#allocation19_spill]] (!%p661_p10)  ;;  %s5470_s5 = sld [smem:[#allocation23_spill]] (!%p661_p10) }
  0x2a   : > { %s5471_s7 = sld [smem:[#allocation25_spill]] (!%p661_p10)  ;;  %s5472_s6 = sld [smem:[#allocation24_spill]] (!%p661_p10) }
  0x2b   : > { %s5511_s22 = smov (!%p764_p12, %s3523_s22), 3  ;;  %s5473_s17 = sld [smem:[#allocation9_spill]] }
  0x2c   : > { %s4583_s28 = scalar_select %p770_p13, %s4376_s21, 1 }
  0x2d   : > { %s3648_s29 = sshll.u32 %s5511_s22, 4 }
  0x2e   : > { %s3968_s18 = smul.u32 192, %s4583_s28  ;;  %s3649_s15 = sshll.u32 %s4583_s28, 6 }
  0x2f   : > { %s4588_s2 = scalar_lea.vmem %s5468_s25, %s3648_s29  ;;  %s3969_s16 = smul.u32 3, %s4583_s28 }
  0x30   : > { %s4604_s21 = scalar_lea.vmem %s5470_s5, %s3968_s18  ;;  %s4609_s29 = scalar_lea.vmem %s5471_s7, %s3649_s15 }
  0x31   : > { %s4614_s30 = scalar_lea.vmem %s5472_s6, %s3969_s16  ;;  %s3650_s26 = sshll.u32 %s4583_s28, 7 }
  0x32   : > { %s3531_s15 = sshll.u32 %s4583_s28, 1  ;;  %s4633_s20 = scalar_lea.vmem %s5415_s11, %s3650_s26 }
  0x33   : > { %s4638_s3 = scalar_lea.vmem %s5416_s12, %s3531_s15  ;;  %s4643_s19 = scalar_lea.vmem %s5417_s13, %s3650_s26 }
  0x34   : > { %s815_s22 = scalar_lea.vmem %s5418_s14, %s4583_s28  ;;  %s762_s5 = scalar_lea.vmem [#allocation3], %s4579_s0 }
  0x35   : > { %p3534_p0 = scmp.ne.s32.totalorder %s5473_s17, 0 }
  0x36   : > { %s5474_s6 = sld [smem:[#allocation20_spill]] (!%p3534_p0)  ;;  %v4394_v1 = vmov (!%p3534_p0), 0   ;;  %v4066_v5 = vld [vmem:[%s4588_s2 + $0x4] ss:$8 sps:$4 sm:$0xff] (!%p3534_p0)   ;;  %vm946_vm0 = vcmask (!%p3534_p0), 523264   ;;  %s5475_s17 = sld [smem:[#allocation21_spill]] (!%p3534_p0) }
  0x37   : > { %820 = sbr.rel (%p3534_p0) target bundleno = 325 (0x145), region = 100  ;;  %953 = vmatprep.subr.bf16.mxu0 (!%p3534_p0), %v4394_v1  ;;  %3944 = vmatprep.subr.bf16.mxu1 (!%p3534_p0), %v4394_v1  ;;  %v4069_v7 = vld [vmem:[%s4588_s2 + $0x14] ss:$8 sps:$4 sm:$0xff] (!%p3534_p0)   ;;  %v4064_v15 = vld [vmem:[%s4588_s2] ss:$8 sps:$4 sm:$0xff] (!%p3534_p0)  }
  0x38   : > { %3552 = vmatprep.mubr.msk.bf16.mxu0 (!%p3534_p0), %vm946_vm0, %v4066_v5  ;;  %3553 = vmatprep.mubr.msk.bf16.mxu1 (!%p3534_p0), %vm946_vm0, %v4069_v7  ;;  %v4067_v16 = vld [vmem:[%s4588_s2 + $0x10] ss:$8 sps:$4 sm:$0xff] (!%p3534_p0)  }
  0x3c   : > { %v4052_v0 = vld [vmem:[%s5474_s6] sm:$0xff] (!%p3534_p0)   ;;  %v4053_v2 = vld [vmem:[%s5474_s6 + $0x8] sm:$0xff] (!%p3534_p0)   ;;  %v4054_v3 = vld [vmem:[%s5474_s6 + $0x10] sm:$0xff] (!%p3534_p0)  }
  0x3d   : > { %954 = vmatpush1.bf16.msra.mxu0 (!%p3534_p0), %v4052_v0  ;;  %3956 = vmatpush1.bf16.msra.mxu1 (!%p3534_p0), %v4052_v0  ;;  %v4055_v4 = vld [vmem:[%s5474_s6 + $0x18] sm:$0xff] (!%p3534_p0)   ;;  %v4056_v6 = vld [vmem:[%s5474_s6 + $0x20] sm:$0xff] (!%p3534_p0)   ;;  %v4057_v8 = vld [vmem:[%s5474_s6 + $0x28] sm:$0xff] (!%p3534_p0)  }
  0x3e   : > { %955 = vmatprep.subr.bf16.mxu0 %v4394_v1  ;;  %3945 = vmatprep.subr.bf16.mxu1 %v4394_v1  ;;  %v4058_v9 = vld [vmem:[%s5474_s6 + $0x30] sm:$0xff]   ;;  %v4059_v10 = vld [vmem:[%s5474_s6 + $0x38] sm:$0xff]   ;;  %v4060_v11 = vld [vmem:[%s5474_s6 + $0x40] sm:$0xff]  }
  0x3f   : > { %v4061_v12 = vld [vmem:[%s5474_s6 + $0x48] sm:$0xff]   ;;  %v4062_v13 = vld [vmem:[%s5474_s6 + $0x50] sm:$0xff]   ;;  %v4063_v14 = vld [vmem:[%s5474_s6 + $0x58] sm:$0xff]  }
  0x40   : > { %v3535_v17 = vld [vmem:[%s5475_s17] ss:$0 sm:$0xff] }
  0x41   : > { %956 = vmatpush1.bf16.msra.mxu0 %v4053_v2  ;;  %3957 = vmatpush1.bf16.msra.mxu1 %v4053_v2 }
  0x42   : > { %957 = vmatprep.subr.bf16.mxu0 %v4394_v1  ;;  %3946 = vmatprep.subr.bf16.mxu1 %v4394_v1 }
  0x45   : > { %958 = vmatpush1.bf16.msra.mxu0 %v4054_v3  ;;  %3958 = vmatpush1.bf16.msra.mxu1 %v4054_v3 }
  0x46   : > { %959 = vmatprep.subr.bf16.mxu0 %v4394_v1  ;;  %3947 = vmatprep.subr.bf16.mxu1 %v4394_v1 }
  0x49   : > { %960 = vmatpush1.bf16.msra.mxu0 %v4055_v4  ;;  %3959 = vmatpush1.bf16.msra.mxu1 %v4055_v4 }
  0x4a   : > { %961 = vmatprep.subr.bf16.mxu0 %v4394_v1  ;;  %3948 = vmatprep.subr.bf16.mxu1 %v4394_v1 }
  0x4d   : > { %962 = vmatpush1.bf16.msra.mxu0 %v4056_v6  ;;  %3960 = vmatpush1.bf16.msra.mxu1 %v4056_v6 }
  0x4e   : > { %963 = vmatprep.subr.bf16.mxu0 %v4394_v1  ;;  %3949 = vmatprep.subr.bf16.mxu1 %v4394_v1 }
  0x51   : > { %964 = vmatpush1.bf16.msra.mxu0 %v4057_v8  ;;  %3961 = vmatpush1.bf16.msra.mxu1 %v4057_v8 }
  0x52   : > { %965 = vmatprep.subr.bf16.mxu0 %v4394_v1  ;;  %3950 = vmatprep.subr.bf16.mxu1 %v4394_v1 }
  0x55   : > { %966 = vmatpush1.bf16.msra.mxu0 %v4058_v9  ;;  %3962 = vmatpush1.bf16.msra.mxu1 %v4058_v9 }
  0x56   : > { %967 = vmatprep.subr.bf16.mxu0 %v4394_v1  ;;  %3951 = vmatprep.subr.bf16.mxu1 %v4394_v1 }
  0x59   : > { %968 = vmatpush1.bf16.msra.mxu0 %v4059_v10  ;;  %3963 = vmatpush1.bf16.msra.mxu1 %v4059_v10 }
  0x5a   : > { %969 = vmatprep.subr.bf16.mxu0 %v4394_v1  ;;  %3952 = vmatprep.subr.bf16.mxu1 %v4394_v1 }
  0x5d   : > { %970 = vmatpush1.bf16.msra.mxu0 %v4060_v11  ;;  %3964 = vmatpush1.bf16.msra.mxu1 %v4060_v11 }
  0x5e   : > { %971 = vmatprep.subr.bf16.mxu0 %v4394_v1  ;;  %3953 = vmatprep.subr.bf16.mxu1 %v4394_v1 }
  0x61   : > { %972 = vmatpush1.bf16.msra.mxu0 %v4061_v12  ;;  %3965 = vmatpush1.bf16.msra.mxu1 %v4061_v12 }
  0x62   : > { %973 = vmatprep.subr.bf16.mxu0 %v4394_v1  ;;  %3954 = vmatprep.subr.bf16.mxu1 %v4394_v1 }
  0x65   : > { %974 = vmatpush1.bf16.msra.mxu0 %v4062_v13  ;;  %3966 = vmatpush1.bf16.msra.mxu1 %v4062_v13 }
  0x66   : > { %975 = vmatprep.subr.bf16.mxu0 %v4394_v1  ;;  %3955 = vmatprep.subr.bf16.mxu1 %v4394_v1 }
  0x69   : > { %976 = vmatpush1.bf16.msra.mxu0 %v4063_v14  ;;  %3967 = vmatpush1.bf16.msra.mxu1 %v4063_v14 }
  0x6c   : > { %986 = vmatmul.mubr.bf16.vlgmr.msra.gmra.mrb[0].mxu0 %v4064_v15  ;;  %994 = vmatmul.mubr.bf16.vlgmr.msra.gmra.mrb[0].mxu1 %v4067_v16 }
 0x13f   : > { %v987_v18 = vpop.f32.mrb[0].mxu0  ;;  %v995_v19 = vpop.f32.mrb[0].mxu1 }
 0x140   : > { %v988_v20 = vadd.f32 %v3535_v17, %v987_v18  ;;  %v996_v21 = vadd.f32 %v3535_v17, %v995_v19  ;;  %v989_v22 = vpop.f32.mrb[1].mxu0  ;;  %v997_v23 = vpop.f32.mrb[1].mxu1 }
 0x141   : > { %v990_v24 = vpop.f32.mrb[2].mxu0  ;;  %v998_v25 = vpop.f32.mrb[2].mxu1 }
 0x142   : > { %1002 = vst [vmem:[#allocation2] sm:$0xff] %v988_v20  ;;  %1004 = vst [vmem:[#allocation2 + $0x10] sm:$0xff] %v996_v21  ;;  %v991_v26 = vadd.f32 %v3535_v17, %v990_v24  ;;  %v999_v27 = vadd.f32 %v3535_v17, %v998_v25  ;;  %v992_v28 = vpop.f32.mrb[3].mxu0  ;;  %v1000_v29 = vpop.f32.mrb[3].mxu1 }
 0x144   : > { %1003 = vst [vmem:[#allocation2 + $0x8] sm:$0xff] %v991_v26  ;;  %1005 = vst [vmem:[#allocation2 + $0x18] sm:$0xff] %v999_v27 }
 0x145 PF: > { %v4100_v34 = vld [vmem:[%s4604_s21 + $0x4] ss:$12 sps:$4 sm:$0xff]   ;;  %v4102_v35 = vld [vmem:[%s4604_s21] ss:$12 sps:$4 sm:$0xff]   ;;  %v4103_v36 = vld [vmem:[%s4604_s21 + $0x1c] ss:$12 sps:$4 sm:$0xff]   ;;  %s5478_s1 = scalar_lea.vmem %s5408_s4, %s4583_s28  ;;  %s5479_s24 = scalar_lea.vmem %s5412_s8, %s4583_s28 }
 0x146   : > { %v4105_v37 = vld [vmem:[%s4604_s21 + $0x8] ss:$12 sps:$4 sm:$0xff]   ;;  %1256 = vmatprep.subr.bf16.mxu0 %v4100_v34  ;;  %v4106_v54 = vld [vmem:[%s4604_s21 + $0x18] ss:$12 sps:$4 sm:$0xff]   ;;  %v4109_v56 = vld [vmem:[%s4604_s21 + $0x20] ss:$12 sps:$4 sm:$0xff]   ;;  %s5480_s17 = scalar_lea.vmem %s5413_s9, %s4583_s28 }
 0x147   : > { %1257 = vmatpush1.bf16.msra.mxu0 %v4102_v35  ;;  %3749 = vmatprep.subr.bf16.mxu1 %v4105_v37  ;;  %v4107_v55 = vld [vmem:[%s4604_s21 + $0x34] ss:$12 sps:$4 sm:$0xff]   ;;  %v4110_v57 = vld [vmem:[%s4604_s21 + $0x30] ss:$12 sps:$4 sm:$0xff]   ;;  %v4111_v58 = vld [vmem:[%s4604_s21 + $0x4c] ss:$12 sps:$4 sm:$0xff]  }
 0x148   : > { %1258 = vmatprep.subr.bf16.mxu0 %v4103_v36  ;;  %3750 = vmatpush3.bf16.msra.mxu1 %v4105_v37  ;;  %v4113_v59 = vld [vmem:[%s4604_s21 + $0x38] ss:$12 sps:$4 sm:$0xff]   ;;  %v4114_v60 = vld [vmem:[%s4604_s21 + $0x48] ss:$12 sps:$4 sm:$0xff]   ;;  %v4117_v62 = vld [vmem:[%s4604_s21 + $0x50] ss:$12 sps:$4 sm:$0xff]  }
 0x149   : > { %v1006_v30 = vld [vmem:[#allocation2] sm:$0xff]  ;;  %v1008_v31 = vld [vmem:[#allocation2 + $0x10] sm:$0xff]  ;;  %3751 = vmatprep.subr.bf16.mxu1 %v4109_v56  ;;  %v4119_v0 = vld [vmem:[%s4604_s21 + $0x7c] ss:$12 sps:$4 sm:$0xff]   ;;  %v4395_v5 = vmov 0   ;;  %s5476_s15 = sld [smem:[#allocation22_spill]] }
 0x14a   : > { %1012 = vadd.xlane.f32.xlu0 %v1006_v30  ;;  %1016 = vadd.xlane.f32.xlu1 %v1008_v31  ;;  %v4115_v61 = vld [vmem:[%s4604_s21 + $0x64] ss:$12 sps:$4 sm:$0xff]   ;;  %v4118_v63 = vld [vmem:[%s4604_s21 + $0x60] ss:$12 sps:$4 sm:$0xff]   ;;  %v4121_v1 = vld [vmem:[%s4604_s21 + $0x68] ss:$12 sps:$4 sm:$0xff]  }
 0x14b   : > { %v1007_v32 = vld [vmem:[#allocation2 + $0x8] sm:$0xff]  ;;  %v1009_v33 = vld [vmem:[#allocation2 + $0x18] sm:$0xff]  ;;  %1259 = vmatpush1.bf16.msra.mxu0 %v4106_v54  ;;  %v4123_v3 = vld [vmem:[%s4604_s21 + $0x94] ss:$12 sps:$4 sm:$0xff]   ;;  %1288 = vmatprep.mubr.bf16.mxu0 %v4395_v5  ;;  %vm4397_vm1 = vmmov 0   ;;  %vm1412_vm2 = vcmask 261120  }
 0x14c   : > { %1260 = vmatprep.subr.bf16.mxu0 %v4107_v55  ;;  %3752 = vmatpush3.bf16.msra.mxu1 %v4109_v56  ;;  %v4122_v2 = vld [vmem:[%s4604_s21 + $0x78] ss:$12 sps:$4 sm:$0xff]   ;;  %v4125_v4 = vld [vmem:[%s4604_s21 + $0x80] ss:$12 sps:$4 sm:$0xff]   ;;  %v4126_v6 = vld [vmem:[%s4604_s21 + $0x90] ss:$12 sps:$4 sm:$0xff]  }
 0x14d   : > { %3753 = vmatprep.subr.bf16.mxu1 %v4113_v59  ;;  %v4127_v7 = vld [vmem:[%s4604_s21 + $0xac] ss:$12 sps:$4 sm:$0xff]   ;;  %v4130_v9 = vld [vmem:[%s4604_s21 + $0xa8] ss:$12 sps:$4 sm:$0xff]   ;;  %v4131_v10 = vld [vmem:[%s4604_s21 + $0xb0] ss:$12 sps:$4 sm:$0xff]  }
 0x14e   : > { %1014 = vadd.xlane.f32.xlu0 %v1007_v32  ;;  %1018 = vadd.xlane.f32.xlu1 %v1009_v33  ;;  %v4129_v8 = vld [vmem:[%s4604_s21 + $0x98] ss:$12 sps:$4 sm:$0xff]   ;;  %s4399_s18 = smov 64   ;;  %s4400_s7 = smov 32   ;;  %vm1805_vm3 = vcmask 130048   ;;  %vm2394_vm4 = vcmask 523264  }
 0x14f   : > { %1261 = vmatpush1.bf16.msra.mxu0 %v4110_v57  ;;  %s5477_s16 = scalar_lea.vmem %s5476_s15, %s4583_s28  ;;  %vm2399_vm5 = vcmask 785408   ;;  %s5481_s15 = scalar_lea.vmem %s5414_s10, %s4583_s28 }
 0x150   : > { %1262 = vmatprep.subr.bf16.mxu0 %v4111_v58  ;;  %3754 = vmatpush3.bf16.msra.mxu1 %v4113_v59  ;;  %v3554_v25 = vld [vmem:[%s5477_s16] ss:$0 sm:$0xff]  ;;  %s5482_s28 = sld [smem:[#allocation9_spill]] }
 0x151   : > { %3755 = vmatprep.subr.bf16.mxu1 %v4117_v62 }
 0x153   : > { %1263 = vmatpush1.bf16.msra.mxu0 %v4114_v60 }
 0x154   : > { %1264 = vmatprep.subr.bf16.mxu0 %v4115_v61  ;;  %3756 = vmatpush3.bf16.msra.mxu1 %v4117_v62 }
 0x155   : > { %3757 = vmatprep.subr.bf16.mxu1 %v4121_v1 }
 0x156   : > { %p3640_p1 = scmp.ne.s32.totalorder %s5482_s28, 1 }
 0x157   : > { %1265 = vmatpush1.bf16.msra.mxu0 %v4118_v63  ;;  %vm3180_vm14 = vcmask (!%p3640_p1), 1040384   ;;  %vm3184_vm15 = vcmask (!%p3640_p1), 1041408   ;;  %s5483_s23 = sld [smem:[#allocation28_spill]] (!%p3640_p1)  ;;  %vm4403_vm0 = vmmov (!%p3640_p1), 0  }
 0x158   : > { %1266 = vmatprep.subr.bf16.mxu0 %v4119_v0  ;;  %3758 = vmatpush3.bf16.msra.mxu1 %v4121_v1 }
 0x159   : > { %3759 = vmatprep.subr.bf16.mxu1 %v4125_v4 }
 0x15b   : > { %1267 = vmatpush1.bf16.msra.mxu0 %v4122_v2 }
 0x15c   : > { %1268 = vmatprep.subr.bf16.mxu0 %v4123_v3  ;;  %3760 = vmatpush3.bf16.msra.mxu1 %v4125_v4 }
 0x15d   : > { %3761 = vmatprep.subr.bf16.mxu1 %v4129_v8  ;;  %s5484_s27 = smov (!%p3640_p1), %s5483_s23 }
 0x15f   : > { %1269 = vmatpush1.bf16.msra.mxu0 %v4126_v6 }
 0x160   : > { %1270 = vmatprep.subr.bf16.mxu0 %v4127_v7  ;;  %3762 = vmatpush3.bf16.msra.mxu1 %v4129_v8 }
 0x161   : > { %3763 = vmatprep.subr.bf16.mxu1 %v4131_v10 }
 0x163   : > { %1271 = vmatpush1.bf16.msra.mxu0 %v4130_v9 }
 0x164   : > { %3764 = vmatpush3.bf16.msra.mxu1 %v4131_v10 }
 0x1d7   : > { %v1013_v38 = vpop.xlane.xlu0 %1012  ;;  %v1017_v39 = vpop.xlane.xlu1 %1016 }
 0x1d8   : > { %v1021_v40 = vmul.f32 0.0078125, %v1013_v38  ;;  %v1023_v41 = vmul.f32 0.0078125, %v1017_v39 }
 0x1da   : > { %v4698_v42 = vsub.f32 %v1006_v30, %v1021_v40  ;;  %v4700_v43 = vsub.f32 %v1008_v31, %v1023_v41  ;;  %v3555_v30 = vld [vmem:[%s5478_s1] ss:$0 sm:$0xff]  ;;  %s5487_s1 = sld [smem:[#allocation29_spill]] (!%p3640_p1) }
 0x1db   : > { %v1015_v44 = vpop.xlane.xlu0 %1014  ;;  %v1019_v45 = vpop.xlane.xlu1 %1018 }
 0x1dc   : > { %v1022_v46 = vmul.f32 0.0078125, %v1015_v44  ;;  %v1029_v47 = vmul.f32 %v4698_v42, %v4698_v42  ;;  %v1024_v48 = vmul.f32 0.0078125, %v1019_v45  ;;  %v1031_v51 = vmul.f32 %v4700_v43, %v4700_v43 }
 0x1dd   : > { %v1113_v44 = vlaneseq }
 0x1de   : > { %v4704_v49 = vsub.f32 %v1007_v32, %v1022_v46  ;;  %1033 = vadd.xlane.f32.xlu0 %v1029_v47  ;;  %v4706_v50 = vsub.f32 %v1009_v33, %v1024_v48  ;;  %v1111_v47 = vld [vmem:[%s4614_s30] sm:$0x7]  ;;  %s4398_s30 = smov 96  }
 0x1df   : > { %v4756_v45 = vshrl.u32 %v1113_v44, 7 }
 0x1e0   : > { %v1030_v52 = vmul.f32 %v4704_v49, %v4704_v49  ;;  %v1032_v53 = vmul.f32 %v4706_v50, %v4706_v50 }
 0x1e1   : > { %v1115_v46 = vsub.s32 0, %v4756_v45  ;;  %v1119_v48 = vsub.s32 1, %v4756_v45 }
 0x1e2   : > { %1037 = vadd.xlane.f32.xlu0 %v1031_v51  ;;  %1035 = vadd.xlane.f32.xlu1 %v1030_v52 }
 0x1e3   : > { %v1120_v52 = vrot.slane %v1111_v47, %v1119_v48 }
 0x1e6   : > { %1039 = vadd.xlane.f32.xlu1 %v1032_v53 }
 0x26b   : > { %v1034_v11 = vpop.xlane.xlu0 %1033 }
 0x26c   : > { %v1041_v12 = vmul.f32 0.0078125, %v1034_v11 }
 0x26e   : > { %v1045_v13 = vadd.f32 1e-05, %v1041_v12 }
 0x26f   : > { %v1036_v14 = vpop.xlane.xlu1 %1035  ;;  %v1038_v15 = vpop.xlane.xlu0 %1037 }
 0x270   : > { %4180 = vrsqrt.f32 %v1045_v13  ;;  %v1042_v16 = vmul.f32 0.0078125, %v1036_v14  ;;  %v1043_v17 = vmul.f32 0.0078125, %v1038_v15 }
 0x272   : > { %v1046_v18 = vadd.f32 1e-05, %v1042_v16  ;;  %v1047_v19 = vadd.f32 1e-05, %v1043_v17 }
 0x273   : > { %v1040_v20 = vpop.xlane.xlu1 %1039 }
 0x274   : > { %4182 = vrsqrt.f32 %v1046_v18  ;;  %v1044_v21 = vmul.f32 0.0078125, %v1040_v20 }
 0x275   : > { %4184 = vrsqrt.f32 %v1047_v19 }
 0x276   : > { %v1048_v22 = vadd.f32 1e-05, %v1044_v21 }
 0x278   : > { %4186 = vrsqrt.f32 %v1048_v22 }
 0x27a   : > { %v4181_v23 = vpop.eup %4180 }
 0x27b   : > { %v1053_v24 = vmul.f32 %v4181_v23, %v4698_v42 }
 0x27d   : > { %v1063_v29 = vmul.f32 %v3554_v25, %v1053_v24 }
 0x27e   : > { %v4183_v26 = vpop.eup %4182 }
 0x27f   : > { %v4185_v27 = vpop.eup %4184  ;;  %v1054_v28 = vmul.f32 %v4183_v26, %v4704_v49  ;;  %v1073_v34 = vadd.f32 %v3555_v30, %v1063_v29  ;;  %v1116_v49 = vrot.slane %v1111_v47, %v1115_v46 }
 0x280   : > { %v1055_v31 = vmul.f32 %v4185_v27, %v4700_v43  ;;  %v4396_v43 = vmov 0.0  }
 0x281   : > { %v1064_v32 = vmul.f32 %v3554_v25, %v1054_v28  ;;  %3769 = vmatprep.subr.bf16.mxu0 %v4396_v43  ;;  %3781 = vmatprep.subr.bf16.mxu1 %v4396_v43 }
 0x282   : > { %v4187_v33 = vpop.eup %4186  ;;  %v1065_v37 = vmul.f32 %v3554_v25, %v1055_v31 }
 0x283   : > { %v1074_v35 = vadd.f32 %v3555_v30, %v1064_v32  ;;  %v1056_v36 = vmul.f32 %v4187_v33, %v4706_v50  ;;  %v1123_v50 = vsub.s32 2, %v4756_v45 }
 0x284   : > { %v1075_v40 = vadd.f32 %v3555_v30, %v1065_v37 }
 0x285   : > { %v1077_v38 = vpack.c.bf16 %v1074_v35, %v1073_v34  ;;  %v1066_v39 = vmul.f32 %v3554_v25, %v1056_v36  ;;  %v1124_v58 = vrot.slane %v1111_v47, %v1123_v50 }
 0x287   : > { %1289 = vmatmul.mubr.bf16.vlgmr.msra.gmra.mrb[0].mxu0 %v1077_v38  ;;  %3765 = vmatprep.mubr.bf16.mxu1 %v1077_v38  ;;  %v1076_v41 = vadd.f32 %v3555_v30, %v1066_v39 }
 0x288   : > { %1298 = vmatprep.mubr.bf16.mxu0 %v4395_v5 }
 0x289   : > { %v1078_v42 = vpack.c.bf16 %v1076_v41, %v1075_v40 }
 0x28b   : > { %3766 = vmatmul.mubr.bf16.vlgmr.msra.gmra.mrb[0].mxu1 %v1078_v42 }
 0x28c   : > { %3783 = vmatprep.mubr.msk.bf16.mxu1 %vm4397_vm1, %v4396_v43 }
 0x28f   : > { %1299 = vmatmul.mubr.bf16.gmra.mrb[4].mxu0 %v1078_v42 }
 0x290   : > { %3771 = vmatprep.mubr.msk.bf16.mxu0 %vm4397_vm1, %v4396_v43 }
 0x35a   : > { %v1290_v51 = vpop.f32.mrb[0].mxu0 }
 0x35b   : > { %v1292_v53 = vpop.f32.mrb[1].mxu0  ;;  %v1291_v55 = vadd.f32 %v1290_v51, %v1116_v49 }
 0x35c   : > { %v1294_v54 = vpop.f32.mrb[2].mxu0  ;;  %v1293_v59 = vadd.f32 %v1292_v53, %v1120_v52 }
 0x35d   : > { %v1295_v56 = vadd.f32 %v1294_v54, %v1116_v49  ;;  %v1296_v57 = vpop.f32.mrb[3].mxu0 }
 0x35e   : > { %v1297_v60 = vadd.f32 %v1296_v57, %v1120_v52  ;;  %v3767_v61 = vpop.f32.mrb[0].mxu1 }
 0x35f   : > { %v1358_v62 = vpack.c.bf16 %v1295_v56, %v1291_v55  ;;  %v1343_v63 = vpop.f32.mrb[1].mxu1  ;;  %v1352_v2 = vadd.f32 %v3767_v61, %v1124_v58 }
 0x360   : > { %v1359_v0 = vpack.c.bf16 %v1297_v60, %v1293_v59  ;;  %v3768_v1 = vpop.f32.mrb[2].mxu1  ;;  %v1344_v6 = vadd.f32 %v1343_v63, %v1124_v58 }
 0x361   : > { %v1355_v3 = vadd.f32 %v3768_v1, %v1124_v58  ;;  %1366 = vrot.lane.b32.xlu1 %v1358_v62, %s4398_s30  ;;  %v1346_v4 = vpop.f32.mrb[3].mxu1 }
 0x362   : > { %v1347_v7 = vadd.f32 %v1346_v4, %v1124_v58  ;;  %1380 = vrot.lane.b32.xlu0 %v1359_v0, %s4398_s30  ;;  %v1300_v8 = vpop.f32.mrb[4].mxu0  ;;  %v1417_v9 = vsel %vm1412_vm2, %v1359_v0, 0 }
 0x363   : > { %v4769_v10 = vpack.c.bf16 %v1355_v3, %v1352_v2  ;;  %v1302_v11 = vpop.f32.mrb[5].mxu0  ;;  %3770 = vmatpush3.bf16.xpose.msra.mxu0 %v1417_v9  ;;  %v1301_v14 = vadd.f32 %v1300_v8, %v1116_v49 }
 0x364   : > { %v4771_v12 = vpack.c.bf16 %v1347_v7, %v1344_v6  ;;  %v1304_v13 = vpop.f32.mrb[6].mxu0  ;;  %3775 = vmatprep.subr.bf16.mxu0 %v4396_v43  ;;  %v1303_v17 = vadd.f32 %v1302_v11, %v1120_v52 }
 0x365   : > { %v1305_v15 = vadd.f32 %v1304_v13, %v1116_v49  ;;  %v1306_v16 = vpop.f32.mrb[7].mxu0 }
 0x366   : > { %v1307_v18 = vadd.f32 %v1306_v16, %v1120_v52 }
 0x367   : > { %v1361_v19 = vpack.c.bf16 %v1305_v15, %v1301_v14 }
 0x368   : > { %v1362_v20 = vpack.c.bf16 %v1307_v18, %v1303_v17 }
 0x369   : > { %1368 = vrot.lane.b32.xlu0 %v1361_v19, %s4398_s30 }
 0x36a   : > { %3772 = vmatmul.mubr.msk.bf16.vlgmr.msra.gmra.mrb[8].mxu0 %vm1412_vm2, %v1358_v62  ;;  %1382 = vrot.lane.b32.xlu1 %v1362_v20, %s4398_s30  ;;  %v1464_v21 = vsel %vm1412_vm2, %v1362_v20, 0 }
 0x36b   : > { %3776 = vmatpush3.bf16.xpose.msra.mxu0 %v1464_v21  ;;  %3777 = vmatprep.mubr.msk.bf16.mxu0 %vm4397_vm1, %v4396_v43 }
 0x36c   : > { %3787 = vmatprep.subr.bf16.mxu0 %v4396_v43 }
 0x36d   : > { %1370 = vrot.lane.b32.xlu0 %v1358_v62, %s4399_s18 }
 0x36e   : > { %1384 = vrot.lane.b32.xlu1 %v1359_v0, %s4399_s18 }
 0x371   : > { %1372 = vrot.lane.b32.xlu0 %v1361_v19, %s4399_s18 }
 0x372   : > { %1386 = vrot.lane.b32.xlu1 %v1362_v20, %s4399_s18  ;;  %3778 = vmatmul.mubr.msk.bf16.vlgmr.msra.gmra.mrb[12].mxu0 %vm1412_vm2, %v1361_v19 }
 0x373   : > { %3789 = vmatprep.mubr.msk.bf16.mxu0 %vm4397_vm1, %v4396_v43 }
 0x375   : > { %1374 = vrot.lane.b32.xlu0 %v1358_v62, %s4400_s7 }
 0x376   : > { %1388 = vrot.lane.b32.xlu1 %v1359_v0, %s4400_s7 }
 0x37a   : > { %1390 = vrot.lane.b32.xlu1 %v1362_v20, %s4400_s7 }
 0x37e   : > { %1376 = vrot.lane.b32.xlu1 %v1361_v19, %s4400_s7 }
 0x3d3   : > { %v1367_v24 = vpop.permute.xlu1 %1366 }
 0x3d4   : > { %v1381_v22 = vpop.permute.xlu0 %1380 }
 0x3d5   : > { %v1511_v23 = vsel %vm1412_vm2, %v1381_v22, 0 }
 0x3d6   : > { %3782 = vmatpush3.bf16.xpose.msra.mxu1 %v1511_v23 }
 0x3d7   : > { %3793 = vmatprep.subr.bf16.mxu1 %v4396_v43 }
 0x3db   : > { %v1369_v27 = vpop.permute.xlu0 %1368 }
 0x3dc   : > { %v1383_v25 = vpop.permute.xlu1 %1382 }
 0x3dd   : > { %v1558_v26 = vsel %vm1412_vm2, %v1383_v25, 0  ;;  %3784 = vmatmul.mubr.msk.bf16.vlgmr.msra.gmra.mrb[4].mxu1 %vm1412_vm2, %v1367_v24 }
 0x3de   : > { %3788 = vmatpush3.bf16.xpose.msra.mxu0 %v1558_v26  ;;  %3795 = vmatprep.mubr.msk.bf16.mxu1 %vm4397_vm1, %v4396_v43 }
 0x3df   : > { %3799 = vmatprep.subr.bf16.mxu0 %v4396_v43  ;;  %v1371_v30 = vpop.permute.xlu0 %1370 }
 0x3e0   : > { %v1385_v28 = vpop.permute.xlu1 %1384 }
 0x3e1   : > { %v1605_v29 = vsel %vm1412_vm2, %v1385_v28, 0 }
 0x3e2   : > { %3794 = vmatpush3.bf16.xpose.msra.mxu1 %v1605_v29 }
 0x3e3   : > { %3805 = vmatprep.subr.bf16.mxu1 %v4396_v43  ;;  %v1373_v35 = vpop.permute.xlu0 %1372 }
 0x3e4   : > { %v1387_v31 = vpop.permute.xlu1 %1386 }
 0x3e5   : > { %v1652_v32 = vsel %vm1412_vm2, %v1387_v31, 0  ;;  %3790 = vmatmul.mubr.msk.bf16.vlgmr.msra.gmra.mrb[16].mxu0 %vm1412_vm2, %v1369_v27 }
 0x3e6   : > { %3800 = vmatpush3.bf16.xpose.msra.mxu0 %v1652_v32  ;;  %3801 = vmatprep.mubr.msk.bf16.mxu0 %vm4397_vm1, %v4396_v43 }
 0x3e7   : > { %3811 = vmatprep.subr.bf16.mxu0 %v4396_v43  ;;  %v1375_v38 = vpop.permute.xlu0 %1374 }
 0x3e8   : > { %v1389_v33 = vpop.permute.xlu1 %1388 }
 0x3e9   : > { %v1699_v34 = vsel %vm1412_vm2, %v1389_v33, 0  ;;  %3796 = vmatmul.mubr.msk.bf16.vlgmr.msra.gmra.mrb[8].mxu1 %vm1412_vm2, %v1371_v30 }
 0x3ea   : > { %3806 = vmatpush3.bf16.xpose.msra.mxu1 %v1699_v34  ;;  %3807 = vmatprep.mubr.msk.bf16.mxu1 %vm4397_vm1, %v4396_v43 }
 0x3eb   : > { %3817 = vmatprep.subr.bf16.mxu1 %v4396_v43 }
 0x3ec   : > { %v1391_v36 = vpop.permute.xlu1 %1390 }
 0x3ed   : > { %v1746_v37 = vsel %vm1412_vm2, %v1391_v36, 0  ;;  %3802 = vmatmul.mubr.msk.bf16.vlgmr.msra.gmra.mrb[20].mxu0 %vm1412_vm2, %v1373_v35 }
 0x3ee   : > { %3812 = vmatpush3.bf16.xpose.msra.mxu0 %v1746_v37  ;;  %3813 = vmatprep.mubr.msk.bf16.mxu0 %vm4397_vm1, %v4396_v43 }
 0x3ef   : > { %3823 = vmatprep.subr.bf16.mxu0 %v4396_v43 }
 0x3f0   : > { %v1377_v39 = vpop.permute.xlu1 %1376 }
 0x3f1   : > { %3808 = vmatmul.mubr.msk.bf16.vlgmr.msra.gmra.mrb[12].mxu1 %vm1412_vm2, %v1375_v38 }
 0x3f2   : > { %3818 = vmatpush3.bf16.msra.mxu1 %v4771_v12  ;;  %3819 = vmatprep.mubr.msk.bf16.mxu1 %vm4397_vm1, %v4396_v43 }
 0x3f3   : > { %3829 = vmatprep.subr.bf16.mxu1 %v4396_v43 }
 0x3f5   : > { %3814 = vmatmul.mubr.msk.bf16.vlgmr.msra.gmra.mrb[24].mxu0 %vm1412_vm2, %v1377_v39 }
 0x3f6   : > { %3824 = vmatpush3.bf16.msra.mxu0 %v4769_v10  ;;  %3825 = vmatprep.mubr.msk.bf16.mxu0 %vm4397_vm1, %v4396_v43 }
 0x3f7   : > { %3835 = vmatprep.subr.bf16.mxu0 %v4396_v43 }
 0x43d   : > { %v1453_v40 = vpop.f32.mrb[8].mxu0 }
 0x43e   : > { %v4826_v41 = vmul.f32 0.17677669, %v1453_v40  ;;  %v3773_v42 = vpop.f32.mrb[9].mxu0 }
 0x43f   : > { %v1456_v44 = vpop.f32.mrb[10].mxu0 }
 0x440   : > { %v4828_v47 = vmul.f32 0.17677669, %v1456_v44  ;;  %v3774_v49 = vpop.f32.mrb[11].mxu0  ;;  %v1806_v50 = vsel %vm1805_vm3, %v4826_v41, -inf }
 0x441   : > { %1807 = vmax.xlane.f32.xlu0 %v1806_v50 }
 0x442   : > { %v1809_v51 = vsel %vm1805_vm3, %v4828_v47, -inf }
 0x443   : > { %1810 = vmax.xlane.f32.xlu1 %v1809_v51 }
 0x445   : > { %v1500_v52 = vpop.f32.mrb[12].mxu0 }
 0x446   : > { %v4834_v53 = vmul.f32 0.17677669, %v1500_v52  ;;  %v3779_v54 = vpop.f32.mrb[13].mxu0 }
 0x447   : > { %v1503_v55 = vpop.f32.mrb[14].mxu0 }
 0x448   : > { %v4836_v56 = vmul.f32 0.17677669, %v1503_v55  ;;  %v3780_v57 = vpop.f32.mrb[15].mxu0  ;;  %v1812_v58 = vsel %vm1805_vm3, %v4834_v53, -inf }
 0x449   : > { %1813 = vmax.xlane.f32.xlu0 %v1812_v58 }
 0x44a   : > { %v1815_v59 = vsel %vm1805_vm3, %v4836_v56, -inf }
 0x44d   : > { %1816 = vmax.xlane.f32.xlu0 %v1815_v59 }
 0x4b0   : > { %v1547_v60 = vpop.f32.mrb[4].mxu1 }
 0x4b1   : > { %v4842_v61 = vmul.f32 0.17677669, %v1547_v60  ;;  %v3785_v62 = vpop.f32.mrb[5].mxu1 }
 0x4b2   : > { %v1550_v63 = vpop.f32.mrb[6].mxu1 }
 0x4b3   : > { %v4844_v0 = vmul.f32 0.17677669, %v1550_v63  ;;  %v3786_v1 = vpop.f32.mrb[7].mxu1  ;;  %v1818_v2 = vsel %vm1805_vm3, %v4842_v61, -inf }
 0x4b4   : > { %1819 = vmax.xlane.f32.xlu0 %v1818_v2 }
 0x4b5   : > { %v1821_v3 = vsel %vm1805_vm3, %v4844_v0, -inf }
 0x4b6   : > { %1822 = vmax.xlane.f32.xlu1 %v1821_v3 }
 0x4b8   : > { %v1594_v4 = vpop.f32.mrb[16].mxu0 }
 0x4b9   : > { %v4850_v6 = vmul.f32 0.17677669, %v1594_v4  ;;  %v3791_v7 = vpop.f32.mrb[17].mxu0 }
 0x4ba   : > { %v1597_v8 = vpop.f32.mrb[18].mxu0 }
 0x4bb   : > { %v4852_v9 = vmul.f32 0.17677669, %v1597_v8  ;;  %v3792_v11 = vpop.f32.mrb[19].mxu0  ;;  %v1824_v13 = vsel %vm1805_vm3, %v4850_v6, -inf }
 0x4bc   : > { %1825 = vmax.xlane.f32.xlu0 %v1824_v13  ;;  %v1641_v14 = vpop.f32.mrb[8].mxu1 }
 0x4bd   : > { %v4856_v15 = vmul.f32 0.17677669, %v1641_v14  ;;  %v3797_v16 = vpop.f32.mrb[9].mxu1  ;;  %v1827_v17 = vsel %vm1805_vm3, %v4852_v9, -inf }
 0x4be   : > { %1828 = vmax.xlane.f32.xlu1 %v1827_v17  ;;  %v1644_v18 = vpop.f32.mrb[10].mxu1 }
 0x4bf   : > { %v4860_v19 = vmul.f32 0.17677669, %v1644_v18  ;;  %v3798_v20 = vpop.f32.mrb[11].mxu1  ;;  %v1830_v21 = vsel %vm1805_vm3, %v4856_v15, -inf }
 0x4c0   : > { %1831 = vmax.xlane.f32.xlu0 %v1830_v21  ;;  %v1688_v22 = vpop.f32.mrb[20].mxu0 }
 0x4c1   : > { %v4864_v23 = vmul.f32 0.17677669, %v1688_v22  ;;  %v3803_v24 = vpop.f32.mrb[21].mxu0  ;;  %v1833_v25 = vsel %vm1805_vm3, %v4860_v19, -inf }
 0x4c2   : > { %1834 = vmax.xlane.f32.xlu1 %v1833_v25  ;;  %v1691_v26 = vpop.f32.mrb[22].mxu0 }
 0x4c3   : > { %v4868_v27 = vmul.f32 0.17677669, %v1691_v26  ;;  %v3804_v28 = vpop.f32.mrb[23].mxu0  ;;  %v1836_v29 = vsel %vm1805_vm3, %v4864_v23, -inf }
 0x4c4   : > { %1837 = vmax.xlane.f32.xlu0 %v1836_v29  ;;  %v1735_v30 = vpop.f32.mrb[12].mxu1 }
 0x4c5   : > { %v4872_v31 = vmul.f32 0.17677669, %v1735_v30  ;;  %v3809_v32 = vpop.f32.mrb[13].mxu1  ;;  %v1839_v33 = vsel %vm1805_vm3, %v4868_v27, -inf }
 0x4c6   : > { %1840 = vmax.xlane.f32.xlu1 %v1839_v33  ;;  %v1738_v34 = vpop.f32.mrb[14].mxu1 }
 0x4c7   : > { %v4876_v35 = vmul.f32 0.17677669, %v1738_v34  ;;  %v3810_v36 = vpop.f32.mrb[15].mxu1  ;;  %v1842_v37 = vsel %vm1805_vm3, %v4872_v31, -inf }
 0x4c8   : > { %v1782_v38 = vpop.f32.mrb[24].mxu0  ;;  %1843 = vmax.xlane.f32.xlu0 %v1842_v37 }
 0x4c9   : > { %v4880_v39 = vmul.f32 0.17677669, %v1782_v38  ;;  %v3815_v40 = vpop.f32.mrb[25].mxu0  ;;  %v1845_v42 = vsel %vm1805_vm3, %v4876_v35, -inf }
 0x4ca   : > { %v1785_v44 = vpop.f32.mrb[26].mxu0  ;;  %1846 = vmax.xlane.f32.xlu1 %v1845_v42 }
 0x4cb   : > { %v3816_v49 = vpop.f32.mrb[27].mxu0  ;;  %v1848_v50 = vsel %vm1805_vm3, %v4880_v39, -inf  ;;  %v4896_v60 = vmul.f32 0.17677669, %v1785_v44 }
 0x4cc   : > { %1849 = vmax.xlane.f32.xlu0 %v1848_v50 }
 0x4ce   : > { %v1808_v51 = vpop.xlane.xlu0 %1807 }
 0x4cf   : > { %v1854_v52 = vsub.f32 %v4826_v41, %v1808_v51  ;;  %v1851_v41 = vsel %vm1805_vm3, %v4896_v60, -inf }
 0x4d0   : > { %v1811_v1 = vpop.xlane.xlu1 %1810 }
 0x4d1   : > { %v1870_v55 = vmul.f32 1.442695, %v1854_v52  ;;  %v1855_v2 = vsub.f32 %v4828_v47, %v1811_v1 }
 0x4d3   : > { %4188 = vpow2.f32 %v1870_v55  ;;  %v1872_v4 = vmul.f32 1.442695, %v1855_v2 }
 0x4d6   : > { %v1814_v54 = vpop.xlane.xlu0 %1813 }
 0x4d7   : > { %v1856_v57 = vsub.f32 %v4834_v53, %v1814_v54 }
 0x4d9   : > { %v1874_v58 = vmul.f32 1.442695, %v1856_v57 }
 0x4da   : > { %v1817_v3 = vpop.xlane.xlu0 %1816 }
 0x4db   : > { %1396 = vrot.lane.b32.xlu1 %v4769_v10, %s4398_s30  ;;  %4190 = vpow2.f32 %v1874_v58  ;;  %v1857_v7 = vsub.f32 %v4836_v56, %v1817_v3 }
 0x4dc   : > { %4192 = vpow2.f32 %v1872_v4 }
 0x4dd   : > { %v4894_v59 = vpop.eup %4188  ;;  %v1876_v8 = vmul.f32 1.442695, %v1857_v7 }
 0x4de   : > { %v1902_v62 = vsel %vm1805_vm3, %v4894_v59, 0.0 }
 0x4df   : > { %1400 = vrot.lane.b32.xlu1 %v4771_v12, %s4399_s18  ;;  %4194 = vpow2.f32 %v1876_v8 }
 0x4e2   : > { %1394 = vrot.lane.b32.xlu0 %v4771_v12, %s4398_s30 }
 0x4e5   : > { %v4900_v63 = vpop.eup %4190 }
 0x4e6   : > { %v1908_v53 = vsel %vm1805_vm3, %v4900_v63, 0.0  ;;  %v4910_v11 = vpop.eup %4192 }
 0x4e7   : > { %v1905_v13 = vsel %vm1805_vm3, %v4910_v11, 0.0 }
 0x4e9   : > { %v4914_v14 = vpop.eup %4194 }
 0x4ea   : > { %v1911_v16 = vsel %vm1805_vm3, %v4914_v14, 0.0 }
 0x501   : > { %1903 = vadd.xlane.f32.xlu0 %v1902_v62 }
 0x503   : > { %1852 = vmax.xlane.f32.xlu1 %v1851_v41 }
 0x505   : > { %1909 = vadd.xlane.f32.xlu0 %v1908_v53 }
 0x514   : > { %1402 = vrot.lane.b32.xlu1 %v4769_v10, %s4399_s18 }
 0x538   : > { %1906 = vadd.xlane.f32.xlu1 %v1905_v13 }
 0x53c   : > { %1912 = vadd.xlane.f32.xlu1 %v1911_v16 }
 0x541   : > { %v1820_v47 = vpop.xlane.xlu0 %1819 }
 0x542   : > { %v1858_v17 = vsub.f32 %v4842_v61, %v1820_v47 }
 0x543   : > { %v1823_v18 = vpop.xlane.xlu1 %1822 }
 0x544   : > { %v1878_v56 = vmul.f32 1.442695, %v1858_v17  ;;  %v1859_v20 = vsub.f32 %v4844_v0, %v1823_v18 }
 0x546   : > { %4196 = vpow2.f32 %v1878_v56  ;;  %v1880_v21 = vmul.f32 1.442695, %v1859_v20 }
 0x548   : > { %4198 = vpow2.f32 %v1880_v21 }
 0x549   : > { %v1826_v22 = vpop.xlane.xlu0 %1825 }
 0x54a   : > { %v1860_v24 = vsub.f32 %v4850_v6, %v1826_v22 }
 0x54b   : > { %v1829_v25 = vpop.xlane.xlu1 %1828 }
 0x54c   : > { %v1882_v26 = vmul.f32 1.442695, %v1860_v24  ;;  %v1861_v28 = vsub.f32 %v4852_v9, %v1829_v25 }
 0x54d   : > { %v1832_v29 = vpop.xlane.xlu0 %1831 }
 0x54e   : > { %4200 = vpow2.f32 %v1882_v26  ;;  %v1884_v30 = vmul.f32 1.442695, %v1861_v28  ;;  %v1862_v32 = vsub.f32 %v4856_v15, %v1832_v29 }
 0x54f   : > { %v1835_v61 = vpop.xlane.xlu1 %1834 }
 0x550   : > { %v4923_v33 = vpop.eup %4196  ;;  %4202 = vpow2.f32 %v1884_v30  ;;  %v1886_v0 = vmul.f32 1.442695, %v1862_v32  ;;  %v1863_v34 = vsub.f32 %v4860_v19, %v1835_v61 }
 0x551   : > { %v1838_v36 = vpop.xlane.xlu0 %1837  ;;  %v1914_v6 = vsel %vm1805_vm3, %v4923_v33, 0.0 }
 0x552   : > { %v4928_v37 = vpop.eup %4198  ;;  %4204 = vpow2.f32 %v1886_v0  ;;  %v1888_v9 = vmul.f32 1.442695, %v1863_v34  ;;  %v1864_v38 = vsub.f32 %v4864_v23, %v1838_v36  ;;  %1915 = vadd.xlane.f32.xlu0 %v1914_v6 }
 0x553   : > { %v1841_v40 = vpop.xlane.xlu1 %1840  ;;  %v1917_v15 = vsel %vm1805_vm3, %v4928_v37, 0.0 }
 0x554   : > { %4206 = vpow2.f32 %v1888_v9  ;;  %v1890_v42 = vmul.f32 1.442695, %v1864_v38  ;;  %v1865_v44 = vsub.f32 %v4868_v27, %v1841_v40  ;;  %1918 = vadd.xlane.f32.xlu1 %v1917_v15 }
 0x555   : > { %v1844_v19 = vpop.xlane.xlu0 %1843 }
 0x556   : > { %4208 = vpow2.f32 %v1890_v42  ;;  %v1892_v49 = vmul.f32 1.442695, %v1865_v44  ;;  %v1866_v50 = vsub.f32 %v4872_v31, %v1844_v19 }
 0x557   : > { %v1847_v51 = vpop.xlane.xlu1 %1846 }
 0x558   : > { %v4935_v52 = vpop.eup %4200  ;;  %4210 = vpow2.f32 %v1892_v49  ;;  %v1894_v23 = vmul.f32 1.442695, %v1866_v50  ;;  %v1867_v54 = vsub.f32 %v4876_v35, %v1847_v51 }
 0x559   : > { %v1850_v55 = vpop.xlane.xlu0 %1849  ;;  %v1920_v57 = vsel %vm1805_vm3, %v4935_v52, 0.0 }
 0x55a   : > { %v4940_v58 = vpop.eup %4202  ;;  %4212 = vpow2.f32 %v1894_v23  ;;  %v1896_v27 = vmul.f32 1.442695, %v1867_v54  ;;  %v1868_v62 = vsub.f32 %v4880_v39, %v1850_v55  ;;  %1921 = vadd.xlane.f32.xlu0 %v1920_v57 }
 0x55b   : > { %v1923_v31 = vsel %vm1805_vm3, %v4940_v58, 0.0  ;;  %v1397_v56 = vpop.permute.xlu1 %1396 }
 0x55c   : > { %v4945_v41 = vpop.eup %4204  ;;  %4214 = vpow2.f32 %v1896_v27  ;;  %v1898_v53 = vmul.f32 1.442695, %v1868_v62  ;;  %1924 = vadd.xlane.f32.xlu1 %v1923_v31 }
 0x55d   : > { %v1926_v35 = vsel %vm1805_vm3, %v4945_v41, 0.0  ;;  %v1395_v28 = vpop.permute.xlu0 %1394 }
 0x55e   : > { %v4949_v1 = vpop.eup %4206  ;;  %4216 = vpow2.f32 %v1898_v53  ;;  %1927 = vadd.xlane.f32.xlu0 %v1926_v35 }
 0x55f   : > { %v1929_v2 = vsel %vm1805_vm3, %v4949_v1, 0.0  ;;  %v1401_v20 = vpop.permute.xlu1 %1400 }
 0x560   : > { %v4953_v39 = vpop.eup %4208  ;;  %1930 = vadd.xlane.f32.xlu1 %v1929_v2 }
 0x561   : > { %v1932_v3 = vsel %vm1805_vm3, %v4953_v39, 0.0 }
 0x562   : > { %v4957_v4 = vpop.eup %4210  ;;  %1933 = vadd.xlane.f32.xlu0 %v1932_v3 }
 0x563   : > { %v1935_v7 = vsel %vm1805_vm3, %v4957_v4, 0.0 }
 0x564   : > { %v4961_v8 = vpop.eup %4212  ;;  %1936 = vadd.xlane.f32.xlu1 %v1935_v7 }
 0x565   : > { %v1938_v13 = vsel %vm1805_vm3, %v4961_v8, 0.0 }
 0x566   : > { %v4965_v16 = vpop.eup %4214  ;;  %1939 = vadd.xlane.f32.xlu0 %v1938_v13 }
 0x567   : > { %v1941_v47 = vsel %vm1805_vm3, %v4965_v16, 0.0 }
 0x568   : > { %v4969_v17 = vpop.eup %4216  ;;  %1942 = vadd.xlane.f32.xlu1 %v1941_v47 }
 0x569   : > { %v1944_v18 = vsel %vm1805_vm3, %v4969_v17, 0.0 }
 0x56a   : > { %1945 = vadd.xlane.f32.xlu0 %v1944_v18 }
 0x580   : > { %1406 = vrot.lane.b32.xlu0 %v4771_v12, %s4400_s7 }
 0x58e   : > { %v1904_v29 = vpop.xlane.xlu0 %1903 }
 0x590   : > { %v1853_v21 = vpop.xlane.xlu1 %1852 }
 0x591   : > { %v1869_v22 = vsub.f32 %v4896_v60, %v1853_v21 }
 0x592   : > { %v1910_v12 = vpop.xlane.xlu0 %1909 }
 0x593   : > { %v1900_v24 = vmul.f32 1.442695, %v1869_v22 }
 0x594   : > { %v4982_v30 = vpop.permute.xlu1 %1402 }
 0x595   : > { %4218 = vpow2.f32 %v1900_v24 }
 0x596   : > { %4220 = vrcp.f32 %v1904_v29 }
 0x59f   : > { %v4976_v25 = vpop.eup %4218 }
 0x5a0   : > { %v1947_v26 = vsel %vm1805_vm3, %v4976_v25, 0.0  ;;  %v4221_v61 = vpop.eup %4220 }
 0x5a1   : > { %1948 = vadd.xlane.f32.xlu1 %v1947_v26  ;;  %v1966_v34 = vmul.f32 %v4221_v61, %v4894_v59 }
 0x5b2   : > { %1408 = vrot.lane.b32.xlu1 %v4769_v10, %s4400_s7 }
 0x5c5   : > { %v1907_v32 = vpop.xlane.xlu1 %1906 }
 0x5c6   : > { %4222 = vrcp.f32 %v1907_v32 }
 0x5c7   : > { %4224 = vrcp.f32 %v1910_v12 }
 0x5c9   : > { %v1913_v60 = vpop.xlane.xlu1 %1912 }
 0x5ca   : > { %4226 = vrcp.f32 %v1913_v60 }
 0x5d0   : > { %v4223_v0 = vpop.eup %4222 }
 0x5d1   : > { %v1967_v36 = vmul.f32 %v4223_v0, %v4910_v11  ;;  %v4225_v6 = vpop.eup %4224 }
 0x5d2   : > { %v1968_v38 = vmul.f32 %v4225_v6, %v4900_v63 }
 0x5d3   : > { %v1982_v9 = vpack.c.bf16 %v1967_v36, %v1966_v34 }
 0x5d4   : > { %v4227_v10 = vpop.eup %4226 }
 0x5d5   : > { %v1969_v40 = vmul.f32 %v4227_v10, %v4914_v14  ;;  %3820 = vmatmul.mubr.msk.bf16.vlgmr.msra.gmra.mrb[16].mxu1 %vm1805_vm3, %v1982_v9 }
 0x5d6   : > { %3830 = vmatpush3.bf16.msra.mxu1 %v1395_v28  ;;  %3831 = vmatprep.mubr.msk.bf16.mxu1 %vm4397_vm1, %v4396_v43 }
 0x5d7   : > { %v1983_v15 = vpack.c.bf16 %v1969_v40, %v1968_v38  ;;  %3841 = vmatprep.subr.bf16.mxu1 %v4396_v43 }
 0x5d9   : > { %3826 = vmatmul.mubr.msk.bf16.vlgmr.msra.gmra.mrb[28].mxu0 %vm1805_vm3, %v1983_v15 }
 0x5da   : > { %3836 = vmatpush3.bf16.msra.mxu0 %v1397_v56  ;;  %3837 = vmatprep.mubr.msk.bf16.mxu0 %vm4397_vm1, %v4396_v43 }
 0x5db   : > { %3847 = vmatprep.subr.bf16.mxu0 %v4396_v43 }
 0x5df   : > { %v1916_v59 = vpop.xlane.xlu0 %1915 }
 0x5e0   : > { %4228 = vrcp.f32 %v1916_v59 }
 0x5e1   : > { %v1919_v63 = vpop.xlane.xlu1 %1918 }
 0x5e2   : > { %4230 = vrcp.f32 %v1919_v63 }
 0x5e7   : > { %v1922_v11 = vpop.xlane.xlu0 %1921 }
 0x5e8   : > { %4232 = vrcp.f32 %v1922_v11 }
 0x5e9   : > { %v1925_v14 = vpop.xlane.xlu1 %1924 }
 0x5ea   : > { %v4229_v42 = vpop.eup %4228  ;;  %4234 = vrcp.f32 %v1925_v14 }
 0x5eb   : > { %v1928_v44 = vpop.xlane.xlu0 %1927  ;;  %v1970_v49 = vmul.f32 %v4229_v42, %v4923_v33 }
 0x5ec   : > { %v4231_v19 = vpop.eup %4230  ;;  %4236 = vrcp.f32 %v1928_v44 }
 0x5ed   : > { %v1971_v50 = vmul.f32 %v4231_v19, %v4928_v37  ;;  %v1931_v51 = vpop.xlane.xlu1 %1930 }
 0x5ee   : > { %4238 = vrcp.f32 %v1931_v51  ;;  %v4132_v51 = vld [vmem:[%s4609_s29] sm:$0xff]  }
 0x5ef   : > { %v1934_v23 = vpop.xlane.xlu0 %1933  ;;  %v1984_v54 = vpack.c.bf16 %v1971_v50, %v1970_v49 }
 0x5f0   : > { %4240 = vrcp.f32 %v1934_v23  ;;  %v4133_v23 = vld [vmem:[%s4609_s29 + $0x8] sm:$0xff]  }
 0x5f1   : > { %v1937_v55 = vpop.xlane.xlu1 %1936  ;;  %3832 = vmatmul.mubr.msk.bf16.vlgmr.msra.gmra.mrb[20].mxu1 %vm1805_vm3, %v1984_v54 }
 0x5f2   : > { %v4233_v57 = vpop.eup %4232  ;;  %4242 = vrcp.f32 %v1937_v55  ;;  %3842 = vmatpush3.bf16.msra.mxu1 %v1401_v20  ;;  %3843 = vmatprep.mubr.msk.bf16.mxu1 %vm4397_vm1, %v4396_v43 }
 0x5f3   : > { %v1940_v27 = vpop.xlane.xlu0 %1939  ;;  %3853 = vmatprep.subr.bf16.mxu1 %v4396_v43  ;;  %v1972_v37 = vmul.f32 %v4233_v57, %v4935_v52 }
 0x5f4   : > { %v4235_v33 = vpop.eup %4234  ;;  %4244 = vrcp.f32 %v1940_v27 }
 0x5f5   : > { %v1973_v62 = vmul.f32 %v4235_v33, %v4940_v58  ;;  %v1943_v31 = vpop.xlane.xlu1 %1942 }
 0x5f6   : > { %v4237_v53 = vpop.eup %4236  ;;  %4246 = vrcp.f32 %v1943_v31 }
 0x5f7   : > { %v1946_v35 = vpop.xlane.xlu0 %1945  ;;  %v1985_v2 = vpack.c.bf16 %v1973_v62, %v1972_v37  ;;  %v1974_v7 = vmul.f32 %v4237_v53, %v4945_v41  ;;  %v4134_v37 = vld [vmem:[%s4609_s29 + $0x10] sm:$0xff]  }
 0x5f8   : > { %v4239_v3 = vpop.eup %4238  ;;  %4248 = vrcp.f32 %v1946_v35  ;;  %v4135_v35 = vld [vmem:[%s4609_s29 + $0x18] sm:$0xff]  }
 0x5f9   : > { %v1975_v13 = vmul.f32 %v4239_v3, %v4949_v1  ;;  %3838 = vmatmul.mubr.msk.bf16.vlgmr.msra.gmra.mrb[32].mxu0 %vm1805_vm3, %v1985_v2  ;;  %v4136_v2 = vld [vmem:[%s4609_s29 + $0x20] sm:$0xff]   ;;  %v4137_v3 = vld [vmem:[%s4609_s29 + $0x28] sm:$0xff]  }
 0x5fa   : > { %v4241_v47 = vpop.eup %4240  ;;  %3848 = vmatpush3.bf16.msra.mxu0 %v4982_v30  ;;  %3849 = vmatprep.mubr.msk.bf16.mxu0 %vm4397_vm1, %v4396_v43 }
 0x5fb   : > { %v1407_v52 = vpop.permute.xlu0 %1406  ;;  %v1986_v58 = vpack.c.bf16 %v1975_v13, %v1974_v7  ;;  %3859 = vmatprep.subr.bf16.mxu0 %v4396_v43  ;;  %v1976_v56 = vmul.f32 %v4241_v47, %v4953_v39  ;;  %v4138_v7 = vld [vmem:[%s4609_s29 + $0x30] sm:$0xff]   ;;  %v4139_v13 = vld [vmem:[%s4609_s29 + $0x38] sm:$0xff]  }
 0x5fc   : > { %v4243_v18 = vpop.eup %4242 }
 0x5fd   : > { %v1977_v20 = vmul.f32 %v4243_v18, %v4957_v4  ;;  %3844 = vmatmul.mubr.msk.bf16.vlgmr.msra.gmra.mrb[24].mxu1 %vm1805_vm3, %v1986_v58 }
 0x5fe   : > { %v4245_v41 = vpop.eup %4244  ;;  %3854 = vmatpush3.bf16.msra.mxu1 %v1407_v52  ;;  %3855 = vmatprep.mubr.msk.bf16.mxu1 %vm4397_vm1, %v4396_v43 }
 0x5ff   : > { %v1987_v1 = vpack.c.bf16 %v1977_v20, %v1976_v56  ;;  %v1978_v22 = vmul.f32 %v4245_v41, %v4961_v8  ;;  %3865 = vmatprep.subr.bf16.mxu1 %v4132_v51 }
 0x600   : > { %v4247_v21 = vpop.eup %4246 }
 0x601   : > { %v1979_v24 = vmul.f32 %v4247_v21, %v4965_v16  ;;  %3850 = vmatmul.mubr.msk.bf16.vlgmr.msra.gmra.mrb[36].mxu0 %vm1805_vm3, %v1987_v1 }
 0x602   : > { %3861 = vmatprep.mubr.msk.bf16.mxu0 %vm4397_vm1, %v4396_v43  ;;  %v4249_v28 = vpop.eup %4248  ;;  %vm3305_vm1 = vcmask (!%p3640_p1), 17408  }
 0x603   : > { %v1988_v39 = vpack.c.bf16 %v1979_v24, %v1978_v22  ;;  %v1980_v30 = vmul.f32 %v4249_v28, %v4969_v17 }
 0x605   : > { %3856 = vmatmul.mubr.msk.bf16.vlgmr.msra.gmra.mrb[28].mxu1 %vm1805_vm3, %v1988_v39 }
 0x606   : > { %3866 = vmatpush3.bf16.msra.mxu1 %v4132_v51  ;;  %v4292_v51 = vld [vmem:[#allocation2] sm:$0xff] }
 0x607   : > { %3867 = vmatprep.subr.bf16.mxu1 %v4133_v23 }
 0x60a   : > { %3868 = vmatpush3.bf16.msra.mxu1 %v4133_v23 }
 0x60b   : > { %3869 = vmatprep.subr.bf16.mxu1 %v4134_v37 }
 0x60e   : > { %3870 = vmatpush3.bf16.msra.mxu1 %v4134_v37 }
 0x60f   : > { %3871 = vmatprep.subr.bf16.mxu1 %v4135_v35 }
 0x612   : > { %3872 = vmatpush3.bf16.msra.mxu1 %v4135_v35  ;;  %v4142_v35 = vld [vmem:[%s4633_s20 + $0x4] ss:$8 sps:$4 sm:$0xff]  }
 0x613   : > { %3873 = vmatprep.subr.bf16.mxu1 %v4136_v2 }
 0x616   : > { %3874 = vmatpush3.bf16.msra.mxu1 %v4136_v2  ;;  %v4145_v2 = vld [vmem:[%s4633_s20 + $0x14] ss:$8 sps:$4 sm:$0xff]  }
 0x617   : > { %3875 = vmatprep.subr.bf16.mxu1 %v4137_v3 }
 0x61a   : > { %3876 = vmatpush3.bf16.msra.mxu1 %v4137_v3  ;;  %v4143_v3 = vld [vmem:[%s4633_s20 + $0x10] ss:$8 sps:$4 sm:$0xff]  }
 0x61b   : > { %3877 = vmatprep.subr.bf16.mxu1 %v4138_v7 }
 0x61e   : > { %3878 = vmatpush3.bf16.msra.mxu1 %v4138_v7 }
 0x61f   : > { %3879 = vmatprep.subr.bf16.mxu1 %v4139_v13 }
 0x622   : > { %3880 = vmatpush3.bf16.msra.mxu1 %v4139_v13 }
 0x62e   : > { %v1949_v4 = vpop.xlane.xlu1 %1948 }
 0x62f   : > { %4250 = vrcp.f32 %v1949_v4 }
 0x632   : > { %v1409_v26 = vpop.permute.xlu1 %1408 }
 0x633   : > { %3860 = vmatpush3.bf16.msra.mxu0 %v1409_v26 }
 0x634   : > { %2706 = vmatprep.subr.bf16.mxu0 %v4142_v35 }
 0x639   : > { %v4251_v29 = vpop.eup %4250 }
 0x63a   : > { %v1981_v8 = vmul.f32 %v4251_v29, %v4976_v25 }
 0x63c   : > { %v1989_v16 = vpack.c.bf16 %v1981_v8, %v1980_v30 }
 0x63e   : > { %3862 = vmatmul.mubr.msk.bf16.vlgmr.msra.gmra.mrb[40].mxu0 %vm1805_vm3, %v1989_v16 }
 0x63f   : > { %2738 = vmatprep.mubr.bf16.mxu0 %v4395_v5 }
 0x6a8   : > { %v5026_v43 = vpop.f32.mrb[16].mxu1 }
 0x6a9   : > { %v3821_v12 = vpop.f32.mrb[17].mxu1 }
 0x6aa   : > { %v5028_v32 = vpop.f32.mrb[18].mxu1 }
 0x6ab   : > { %v3822_v60 = vpop.f32.mrb[19].mxu1 }
 0x6ac   : > { %v5030_v61 = vpop.f32.mrb[28].mxu0 }
 0x6ad   : > { %v3827_v0 = vpop.f32.mrb[29].mxu0 }
 0x6ae   : > { %v5032_v34 = vpop.f32.mrb[30].mxu0 }
 0x6af   : > { %v3828_v36 = vpop.f32.mrb[31].mxu0 }
 0x6c4   : > { %v2115_v17 = vpop.f32.mrb[20].mxu1 }
 0x6c5   : > { %v3833_v6 = vpop.f32.mrb[21].mxu1 }
 0x6c6   : > { %v2118_v25 = vpop.f32.mrb[22].mxu1 }
 0x6c7   : > { %v4070_v9 = vpack.i.bf16 %v2118_v25, %v2115_v17  ;;  %v3834_v10 = vpop.f32.mrb[23].mxu1 }
 0x6c9   : > { %4071 = vrot.lane.b32.xlu0 %v4070_v9, %s4400_s7 }
 0x6cc   : > { %v2159_v38 = vpop.f32.mrb[32].mxu0 }
 0x6cd   : > { %v3839_v40 = vpop.f32.mrb[33].mxu0 }
 0x6ce   : > { %v2162_v15 = vpop.f32.mrb[34].mxu0 }
 0x6cf   : > { %v4075_v59 = vpack.i.bf16 %v2162_v15, %v2159_v38  ;;  %v3840_v63 = vpop.f32.mrb[35].mxu0 }
 0x6d0   : > { %v2203_v11 = vpop.f32.mrb[24].mxu1 }
 0x6d1   : > { %4076 = vrot.lane.b32.xlu1 %v4075_v59, %s4400_s7  ;;  %v3845_v14 = vpop.f32.mrb[25].mxu1 }
 0x6d2   : > { %v2206_v42 = vpop.f32.mrb[26].mxu1 }
 0x6d3   : > { %v4080_v44 = vpack.i.bf16 %v2206_v42, %v2203_v11  ;;  %v3846_v19 = vpop.f32.mrb[27].mxu1 }
 0x6d4   : > { %v2247_v49 = vpop.f32.mrb[36].mxu0 }
 0x6d5   : > { %4081 = vrot.lane.b32.xlu0 %v4080_v44, %s4399_s18  ;;  %v3851_v50 = vpop.f32.mrb[37].mxu0 }
 0x6d6   : > { %v2250_v54 = vpop.f32.mrb[38].mxu0 }
 0x6d7   : > { %v4085_v55 = vpack.i.bf16 %v2250_v54, %v2247_v49  ;;  %v3852_v57 = vpop.f32.mrb[39].mxu0 }
 0x6d8   : > { %v2291_v27 = vpop.f32.mrb[28].mxu1 }
 0x6d9   : > { %4086 = vrot.lane.b32.xlu1 %v4085_v55, %s4399_s18  ;;  %v3857_v33 = vpop.f32.mrb[29].mxu1  ;;  %v4293_v55 = vld [vmem:[#allocation2 + $0x8] sm:$0xff] }
 0x6da   : > { %v2294_v62 = vpop.f32.mrb[30].mxu1 }
 0x6db   : > { %v4090_v31 = vpack.i.bf16 %v2294_v62, %v2291_v27  ;;  %v3858_v53 = vpop.f32.mrb[31].mxu1  ;;  %v4294_v27 = vld [vmem:[#allocation2 + $0x10] sm:$0xff]  ;;  %v4295_v62 = vld [vmem:[#allocation2 + $0x18] sm:$0xff] }
 0x6dc   : > { %v4140_v53 = vld [vmem:[%s4633_s20] ss:$8 sps:$4 sm:$0xff]  }
 0x6dd   : > { %4091 = vrot.lane.b32.xlu0 %v4090_v31, %s4398_s30  ;;  %2707 = vmatpush1.bf16.msra.mxu0 %v4140_v53 }
 0x6de   : > { %2708 = vmatprep.subr.bf16.mxu0 %v4145_v2 }
 0x6e1   : > { %2709 = vmatpush1.bf16.msra.mxu0 %v4143_v3 }
 0x711   : > { %v2335_v47 = vpop.f32.mrb[40].mxu0 }
 0x712   : > { %v3863_v52 = vpop.f32.mrb[41].mxu0 }
 0x713   : > { %v2338_v58 = vpop.f32.mrb[42].mxu0 }
 0x714   : > { %v4095_v18 = vpack.i.bf16 %v2338_v58, %v2335_v47  ;;  %v3864_v56 = vpop.f32.mrb[43].mxu0 }
 0x716   : > { %4096 = vrot.lane.b32.xlu1 %v4095_v18, %s4398_s30 }
 0x73b   : > { %v4072_v20 = vpop.permute.xlu0 %4071 }
 0x73c   : > { %v4074_v1 = vunpack.i.h.bf16 %v4072_v20  ;;  %v4073_v21 = vunpack.i.l.bf16 %v4072_v20 }
 0x73e   : > { %v2391_v4 = vsel %vm1412_vm2, %v5028_v32, %v4074_v1  ;;  %v2390_v26 = vsel %vm1412_vm2, %v5026_v43, %v4073_v21 }
 0x743   : > { %v4077_v0 = vpop.permute.xlu1 %4076 }
 0x744   : > { %v4079_v17 = vunpack.i.h.bf16 %v4077_v0  ;;  %v4078_v32 = vunpack.i.l.bf16 %v4077_v0  ;;  %v4155_v0 = vld [vmem:[%s4633_s20 + $0x50] ss:$8 sps:$4 sm:$0xff]  }
 0x746   : > { %v2393_v9 = vsel %vm1412_vm2, %v5032_v34, %v4079_v17  ;;  %v2392_v10 = vsel %vm1412_vm2, %v5030_v61, %v4078_v32  ;;  %v3596_v34 = vld [vmem:[%s5479_s24] ss:$0 sm:$0xff]  ;;  %v4163_v32 = vld [vmem:[%s4633_s20 + $0x74] ss:$8 sps:$4 sm:$0xff]  }
 0x747   : > { %v4082_v41 = vpop.permute.xlu0 %4081  ;;  %v4158_v17 = vld [vmem:[%s4633_s20 + $0x60] ss:$8 sps:$4 sm:$0xff]  }
 0x748   : > { %v4084_v22 = vunpack.i.h.bf16 %v4082_v41  ;;  %v4083_v24 = vunpack.i.l.bf16 %v4082_v41 }
 0x74a   : > { %v2395_v30 = vsel %vm2394_vm4, %v2390_v26, %v4083_v24  ;;  %v2396_v8 = vsel %vm2394_vm4, %v2391_v4, %v4084_v22 }
 0x74b   : > { %v4087_v36 = vpop.permute.xlu1 %4086 }
 0x74c   : > { %v4089_v6 = vunpack.i.h.bf16 %v4087_v36  ;;  %v4088_v25 = vunpack.i.l.bf16 %v4087_v36  ;;  %v4160_v36 = vld [vmem:[%s4633_s20 + $0x64] ss:$8 sps:$4 sm:$0xff]  }
 0x74e   : > { %v2398_v15 = vsel %vm2394_vm4, %v2393_v9, %v4089_v6  ;;  %v2397_v59 = vsel %vm2394_vm4, %v2392_v10, %v4088_v25  ;;  %v4161_v6 = vld [vmem:[%s4633_s20 + $0x70] ss:$8 sps:$4 sm:$0xff]  }
 0x74f   : > { %v4092_v39 = vpop.permute.xlu0 %4091 }
 0x750   : > { %v4094_v28 = vunpack.i.h.bf16 %v4092_v39  ;;  %v4093_v29 = vunpack.i.l.bf16 %v4092_v39 }
 0x752   : > { %v2400_v16 = vsel %vm2399_vm5, %v2395_v30, %v4093_v29  ;;  %v2401_v12 = vsel %vm2399_vm5, %v2396_v8, %v4094_v28  ;;  %v4148_v28 = vld [vmem:[%s4633_s20 + $0x24] ss:$8 sps:$4 sm:$0xff]   ;;  %v4146_v29 = vld [vmem:[%s4633_s20 + $0x20] ss:$8 sps:$4 sm:$0xff]   ;;  %v4151_v30 = vld [vmem:[%s4633_s20 + $0x34] ss:$8 sps:$4 sm:$0xff]  }
 0x753   : > { %v2404_v60 = vpack.c.bf16 %v2401_v12, %v2400_v16  ;;  %2710 = vmatprep.subr.bf16.mxu0 %v4148_v28  ;;  %v4149_v8 = vld [vmem:[%s4633_s20 + $0x30] ss:$8 sps:$4 sm:$0xff]   ;;  %v4154_v16 = vld [vmem:[%s4633_s20 + $0x44] ss:$8 sps:$4 sm:$0xff]   ;;  %v4152_v12 = vld [vmem:[%s4633_s20 + $0x40] ss:$8 sps:$4 sm:$0xff]  }
 0x754   : > { %2711 = vmatpush1.bf16.msra.mxu0 %v4146_v29  ;;  %v4177_v28 = vld [vmem:[%s4643_s19 + $0x30] sm:$0xff]   ;;  %v4178_v29 = vld [vmem:[%s4643_s19 + $0x78] sm:$0xff]  }
 0x755   : > { %3881 = vmatprep.mubr.bf16.mxu1 %v2404_v60  ;;  %2712 = vmatprep.subr.bf16.mxu0 %v4151_v30  ;;  %v4157_v60 = vld [vmem:[%s4633_s20 + $0x54] ss:$8 sps:$4 sm:$0xff]  }
 0x756   : > { %v4179_v30 = vld [vmem:[%s4643_s19 + $0x38] sm:$0xff]  }
 0x758   : > { %2713 = vmatpush1.bf16.msra.mxu0 %v4149_v8  ;;  %v2614_v8 = vld [vmem:[%s4638_s3] sm:$0x3]  ;;  %s5485_s3 = sld [smem:[#allocation26_spill]] (!%p3640_p1) }
 0x759   : > { %2714 = vmatprep.subr.bf16.mxu0 %v4154_v16  ;;  %v2619_v16 = vrot.slane %v2614_v8, %v1115_v46 }
 0x75c   : > { %2715 = vmatpush1.bf16.msra.mxu0 %v4152_v12  ;;  %v5133_v12 = vrot.slane %v2614_v8, %v1119_v48 }
 0x75d   : > { %2716 = vmatprep.subr.bf16.mxu0 %v4157_v60 }
 0x760   : > { %2717 = vmatpush1.bf16.msra.mxu0 %v4155_v0 }
 0x761   : > { %2718 = vmatprep.subr.bf16.mxu0 %v4160_v36 }
 0x764   : > { %2719 = vmatpush1.bf16.msra.mxu0 %v4158_v17 }
 0x765   : > { %2720 = vmatprep.subr.bf16.mxu0 %v4163_v32 }
 0x768   : > { %2721 = vmatpush1.bf16.msra.mxu0 %v4161_v6 }
 0x788   : > { %v4097_v43 = vpop.permute.xlu1 %4096 }
 0x789   : > { %v4099_v38 = vunpack.i.h.bf16 %v4097_v43  ;;  %v4098_v40 = vunpack.i.l.bf16 %v4097_v43 }
 0x78b   : > { %v2403_v63 = vsel %vm2399_vm5, %v2398_v15, %v4099_v38  ;;  %v2402_v11 = vsel %vm2399_vm5, %v2397_v59, %v4098_v40 }
 0x78c   : > { %v2405_v14 = vpack.c.bf16 %v2403_v63, %v2402_v11 }
 0x78e   : > { %3882 = vmatmul.mubr.bf16.vlgmr.msra.gmra.mrb[32].mxu1 %v2405_v14 }
 0x861   : > { %v3883_v42 = vpop.f32.mrb[32].mxu1 }
 0x862   : > { %v2511_v44 = vpop.f32.mrb[33].mxu1  ;;  %v2520_v50 = vadd.f32 %v3883_v42, %v3596_v34 }
 0x863   : > { %v2512_v61 = vadd.f32 %v3596_v34, %v2511_v44  ;;  %v3884_v19 = vpop.f32.mrb[34].mxu1  ;;  %v3605_v44 = vld [vmem:[%s5480_s17] ss:$0 sm:$0xff] }
 0x864   : > { %v2514_v49 = vpop.f32.mrb[35].mxu1  ;;  %v5074_v33 = vadd.f32 %v4294_v27, %v2520_v50  ;;  %v2523_v37 = vadd.f32 %v3884_v19, %v3596_v34 }
 0x865   : > { %v5069_v23 = vadd.f32 %v4292_v51, %v2512_v61  ;;  %v2515_v54 = vadd.f32 %v3596_v34, %v2514_v49 }
 0x866   : > { %v5078_v31 = vadd.f32 %v4295_v62, %v2523_v37 }
 0x867   : > { %v5071_v57 = vadd.f32 %v4293_v55, %v2515_v54  ;;  %2532 = vadd.xlane.f32.xlu0 %v5069_v23  ;;  %v3606_v54 = vld [vmem:[%s5481_s15] ss:$0 sm:$0xff] }
 0x869   : > { %2534 = vadd.xlane.f32.xlu1 %v5071_v57 }
 0x86b   : > { %2536 = vadd.xlane.f32.xlu0 %v5074_v33 }
 0x86f   : > { %2538 = vadd.xlane.f32.xlu0 %v5078_v31 }
 0x8f4   : > { %v2533_v7 = vpop.xlane.xlu0 %2532 }
 0x8f5   : > { %v2540_v13 = vmul.f32 0.0078125, %v2533_v7 }
 0x8f6   : > { %v2535_v47 = vpop.xlane.xlu1 %2534 }
 0x8f7   : > { %v2544_v52 = vsub.f32 %v5069_v23, %v2540_v13  ;;  %v2541_v58 = vmul.f32 0.0078125, %v2535_v47 }
 0x8f8   : > { %v2537_v18 = vpop.xlane.xlu0 %2536 }
 0x8f9   : > { %v2545_v56 = vsub.f32 %v5071_v57, %v2541_v58  ;;  %v2542_v20 = vmul.f32 0.0078125, %v2537_v18  ;;  %v2548_v41 = vmul.f32 %v2544_v52, %v2544_v52  ;;  %v4164_v58 = vld [vmem:[%s4643_s19 + $0x40] sm:$0xff]  }
 0x8fa   : > { %v4165_v18 = vld [vmem:[%s4643_s19] sm:$0xff]   ;;  %3704 = vmatprep.subr.bf16.mxu1 %v4164_v58 }
 0x8fb   : > { %v2546_v1 = vsub.f32 %v5074_v33, %v2542_v20  ;;  %2552 = vadd.xlane.f32.xlu0 %v2548_v41  ;;  %v2549_v21 = vmul.f32 %v2545_v56, %v2545_v56  ;;  %3705 = vmatpush3.bf16.msra.mxu1 %v4165_v18  ;;  %v4167_v20 = vld [vmem:[%s4643_s19 + $0x8] sm:$0xff]   ;;  %v4168_v41 = vld [vmem:[%s4643_s19 + $0x50] sm:$0xff]   ;;  %v4401_v18 = vmov -1.0  }
 0x8fc   : > { %v2539_v22 = vpop.xlane.xlu0 %2538 }
 0x8fd   : > { %v2543_v24 = vmul.f32 0.0078125, %v2539_v22  ;;  %2554 = vadd.xlane.f32.xlu1 %v2549_v21  ;;  %v2550_v39 = vmul.f32 %v2546_v1, %v2546_v1  ;;  %v4171_v21 = vld [vmem:[%s4643_s19 + $0x18] sm:$0xff]   ;;  %v4172_v22 = vld [vmem:[%s4643_s19 + $0x60] sm:$0xff]  }
 0x8ff   : > { %v2547_v4 = vsub.f32 %v5078_v31, %v2543_v24  ;;  %2556 = vadd.xlane.f32.xlu0 %v2550_v39  ;;  %v4173_v24 = vld [vmem:[%s4643_s19 + $0x20] sm:$0xff]   ;;  %v4174_v39 = vld [vmem:[%s4643_s19 + $0x68] sm:$0xff]  }
 0x901   : > { %v2551_v26 = vmul.f32 %v2547_v4, %v2547_v4 }
 0x903   : > { %2558 = vadd.xlane.f32.xlu1 %v2551_v26  ;;  %v4176_v26 = vld [vmem:[%s4643_s19 + $0x70] sm:$0xff]  }
 0x988   : > { %v2553_v25 = vpop.xlane.xlu0 %2552 }
 0x989   : > { %v2560_v43 = vmul.f32 0.0078125, %v2553_v25 }
 0x98a   : > { %v2555_v9 = vpop.xlane.xlu1 %2554 }
 0x98b   : > { %v2564_v10 = vadd.f32 1e-05, %v2560_v43  ;;  %v2561_v38 = vmul.f32 0.0078125, %v2555_v9 }
 0x98c   : > { %v2557_v40 = vpop.xlane.xlu0 %2556 }
 0x98d   : > { %4252 = vrsqrt.f32 %v2564_v10  ;;  %v2565_v15 = vadd.f32 1e-05, %v2561_v38  ;;  %v2562_v59 = vmul.f32 0.0078125, %v2557_v40 }
 0x98f   : > { %4254 = vrsqrt.f32 %v2565_v15  ;;  %v2566_v63 = vadd.f32 1e-05, %v2562_v59 }
 0x990   : > { %v2559_v11 = vpop.xlane.xlu1 %2558 }
 0x991   : > { %4256 = vrsqrt.f32 %v2566_v63  ;;  %v2563_v14 = vmul.f32 0.0078125, %v2559_v11 }
 0x993   : > { %v2567_v34 = vadd.f32 1e-05, %v2563_v14 }
 0x995   : > { %4258 = vrsqrt.f32 %v2567_v34 }
 0x997   : > { %v4253_v42 = vpop.eup %4252 }
 0x998   : > { %v2572_v61 = vmul.f32 %v4253_v42, %v2544_v52 }
 0x999   : > { %v4255_v19 = vpop.eup %4254 }
 0x99a   : > { %v2573_v49 = vmul.f32 %v4255_v19, %v2545_v56  ;;  %v2582_v50 = vmul.f32 %v3605_v44, %v2572_v61  ;;  %v4166_v56 = vld [vmem:[%s4643_s19 + $0x48] sm:$0xff]  }
 0x99b   : > { %v4257_v51 = vpop.eup %4256  ;;  %3706 = vmatprep.subr.bf16.mxu1 %v4166_v56 }
 0x99c   : > { %v2583_v55 = vmul.f32 %v3605_v44, %v2573_v49  ;;  %v2592_v27 = vadd.f32 %v3606_v54, %v2582_v50  ;;  %v2574_v62 = vmul.f32 %v4257_v51, %v2546_v1  ;;  %3707 = vmatpush3.bf16.msra.mxu1 %v4167_v20  ;;  %v4170_v1 = vld [vmem:[%s4643_s19 + $0x58] sm:$0xff]  }
 0x99d   : > { %3708 = vmatprep.subr.bf16.mxu1 %v4168_v41 }
 0x99e   : > { %v2593_v37 = vadd.f32 %v3606_v54, %v2583_v55  ;;  %v2584_v3 = vmul.f32 %v3605_v44, %v2574_v62 }
 0x99f   : > { %v4259_v53 = vpop.eup %4258 }
 0x9a0   : > { %v2596_v35 = vpack.c.bf16 %v2593_v37, %v2592_v27  ;;  %v2575_v2 = vmul.f32 %v4259_v53, %v2547_v4  ;;  %v2594_v47 = vadd.f32 %v3606_v54, %v2584_v3  ;;  %v4175_v4 = vld [vmem:[%s4643_s19 + $0x28] sm:$0xff]  }
 0x9a2   : > { %2739 = vmatmul.mubr.bf16.vlgmr.msra.gmra.mrb[44].mxu0 %v2596_v35  ;;  %v2585_v7 = vmul.f32 %v3605_v44, %v2575_v2 }
 0x9a3   : > { %2748 = vmatprep.mubr.bf16.mxu0 %v4395_v5  ;;  %v4169_v5 = vld [vmem:[%s4643_s19 + $0x10] sm:$0xff]  }
 0x9a4   : > { %v2595_v13 = vadd.f32 %v3606_v54, %v2585_v7  ;;  %3709 = vmatpush3.bf16.msra.mxu1 %v4169_v5 }
 0x9a5   : > { %3710 = vmatprep.subr.bf16.mxu1 %v4170_v1 }
 0x9a6   : > { %v2597_v52 = vpack.c.bf16 %v2595_v13, %v2594_v47 }
 0x9a8   : > { %3711 = vmatpush3.bf16.msra.mxu1 %v4171_v21 }
 0x9a9   : > { %3712 = vmatprep.subr.bf16.mxu1 %v4172_v22 }
 0x9aa   : > { %2749 = vmatmul.mubr.bf16.gmra.mrb[48].mxu0 %v2597_v52 }
 0x9ac   : > { %3713 = vmatpush3.bf16.msra.mxu1 %v4173_v24 }
 0x9ad   : > { %3714 = vmatprep.subr.bf16.mxu1 %v4174_v39 }
 0x9b0   : > { %3715 = vmatpush3.bf16.msra.mxu1 %v4175_v4 }
 0x9b1   : > { %3716 = vmatprep.subr.bf16.mxu1 %v4176_v26 }
 0x9b4   : > { %3717 = vmatpush3.bf16.msra.mxu1 %v4177_v28 }
 0x9b5   : > { %3718 = vmatprep.subr.bf16.mxu1 %v4178_v29 }
 0x9b8   : > { %3719 = vmatpush3.bf16.msra.mxu1 %v4179_v30 }
 0xa75   : > { %v2740_v60 = vpop.f32.mrb[44].mxu0 }
 0xa76   : > { %v2741_v0 = vadd.f32 %v2740_v60, %v2619_v16  ;;  %v2742_v36 = vpop.f32.mrb[45].mxu0 }
 0xa77   : > { %v2743_v17 = vadd.f32 %v2742_v36, %v5133_v12  ;;  %v2744_v32 = vpop.f32.mrb[46].mxu0 }
 0xa78   : > { %v2767_v6 = vmul.f32 0.70710677, %v2741_v0  ;;  %v2745_v25 = vadd.f32 %v2744_v32, %v2619_v16  ;;  %v2746_v43 = vpop.f32.mrb[47].mxu0  ;;  %v5166_v47 = vmul.f32 0.5, %v2741_v0 }
 0xa79   : > { %v5136_v9 = vmul.f32 0.70710677, %v2743_v17  ;;  %v5141_v46 = vadd.f32 %v2746_v43, %v5133_v12  ;;  %v5168_v52 = vmul.f32 0.5, %v2743_v17 }
 0xa7a   : > { %v2791_v10 = vand.u32 2147483647, %v2767_v6  ;;  %v5138_v38 = vmul.f32 0.70710677, %v2745_v25  ;;  %vm2775_vm6 = vcmp.ge.f32.partialorder %v2767_v6, 0.0  ;;  %v5174_v41 = vmul.f32 0.5, %v2745_v25 }
 0xa7b   : > { %v2792_v45 = vand.u32 2147483647, %v5136_v9  ;;  %v5146_v63 = vmul.f32 0.70710677, %v5141_v46  ;;  %v5172_v56 = vsel %vm2775_vm6, 1.0, %v4401_v18  ;;  %vm2776_vm7 = vcmp.ge.f32.partialorder %v5136_v9, 0.0 }
 0xa7c   : > { %v2799_v48 = vmul.f32 0.3275911, %v2791_v10  ;;  %v2793_v15 = vand.u32 2147483647, %v5138_v38  ;;  %v2903_v51 = vsub.f32 0.0, %v2791_v10  ;;  %vm2777_vm8 = vcmp.ge.f32.partialorder %v5138_v38, 0.0 }
 0xa7d   : > { %v2800_v40 = vmul.f32 0.3275911, %v2792_v45  ;;  %v2750_v11 = vpop.f32.mrb[48].mxu0  ;;  %v2794_v44 = vand.u32 2147483647, %v5146_v63  ;;  %v2904_v62 = vsub.f32 0.0, %v2792_v45 }
 0xa7e   : > { %v2807_v59 = vadd.f32 1.0, %v2799_v48  ;;  %v2801_v34 = vmul.f32 0.3275911, %v2793_v15  ;;  %v2752_v42 = vpop.f32.mrb[49].mxu0  ;;  %v5149_v54 = vadd.f32 %v2750_v11, %v2619_v16  ;;  %v2911_v2 = vmul.f32 %v2903_v51, %v2791_v10 }
 0xa7f   : > { %v2808_v14 = vadd.f32 1.0, %v2800_v40  ;;  %v2754_v61 = vpop.f32.mrb[50].mxu0  ;;  %v2802_v50 = vmul.f32 0.3275911, %v2794_v44  ;;  %v5152_v55 = vadd.f32 %v2752_v42, %v5133_v12  ;;  %v2905_v3 = vsub.f32 0.0, %v2793_v15 }
 0xa80   : > { %4260 = vrcp.f32 %v2807_v59  ;;  %v2809_v19 = vadd.f32 1.0, %v2801_v34  ;;  %v2756_v49 = vpop.f32.mrb[51].mxu0  ;;  %v5154_v37 = vadd.f32 %v2754_v61, %v2619_v16  ;;  %v5157_v53 = vmul.f32 0.70710677, %v5149_v54 }
 0xa81   : > { %4262 = vrcp.f32 %v2808_v14  ;;  %v2810_v27 = vadd.f32 1.0, %v2802_v50  ;;  %v5160_v35 = vmul.f32 0.70710677, %v5152_v55  ;;  %v2912_v20 = vmul.f32 %v2904_v62, %v2792_v45 }
 0xa82   : > { %4264 = vrcp.f32 %v2809_v19  ;;  %v2795_v7 = vand.u32 2147483647, %v5157_v53  ;;  %v5164_v13 = vmul.f32 0.70710677, %v5154_v37  ;;  %v2906_v21 = vsub.f32 0.0, %v2794_v44 }
 0xa83   : > { %4266 = vrcp.f32 %v2810_v27  ;;  %v2796_v58 = vand.u32 2147483647, %v5160_v35  ;;  %v2919_v26 = vmul.f32 1.442695, %v2911_v2  ;;  %v2913_v28 = vmul.f32 %v2905_v3, %v2793_v15 }
 0xa84   : > { %v2803_v5 = vmul.f32 0.3275911, %v2795_v7  ;;  %v5180_v24 = vand.u32 2147483647, %v5164_v13  ;;  %v5188_v60 = vadd.f32 %v2756_v49, %v5133_v12  ;;  %v2921_v36 = vmul.f32 1.442695, %v2912_v20 }
 0xa85   : > { %v2804_v22 = vmul.f32 0.3275911, %v2796_v58  ;;  %v2914_v6 = vmul.f32 %v2906_v21, %v2794_v44  ;;  %v2907_v45 = vsub.f32 0.0, %v2795_v7  ;;  %v2923_v40 = vmul.f32 1.442695, %v2913_v28 }
 0xa86   : > { %v2811_v29 = vadd.f32 1.0, %v2803_v5  ;;  %v2805_v16 = vmul.f32 0.3275911, %v5180_v24  ;;  %v2908_v15 = vsub.f32 0.0, %v2796_v58  ;;  %v5199_v59 = vmul.f32 0.70710677, %v5188_v60 }
 0xa87   : > { %v2812_v8 = vadd.f32 1.0, %v2804_v22  ;;  %v5205_v42 = vsel %vm2776_vm7, 1.0, %v4401_v18  ;;  %v2925_v61 = vmul.f32 1.442695, %v2914_v6  ;;  %v2915_v51 = vmul.f32 %v2907_v45, %v2795_v7 }
 0xa88   : > { %4268 = vrcp.f32 %v2811_v29  ;;  %v2813_v25 = vadd.f32 1.0, %v2805_v16  ;;  %v5213_v62 = vsel %vm2777_vm8, 1.0, %v4401_v18  ;;  %v2916_v2 = vmul.f32 %v2908_v15, %v2796_v58 }
 0xa89   : > { %4270 = vrcp.f32 %v2812_v8  ;;  %v5216_v9 = vand.u32 2147483647, %v5199_v59  ;;  %v2909_v7 = vsub.f32 0.0, %v5180_v24  ;;  %vm2778_vm9 = vcmp.ge.f32.partialorder %v5146_v63, 0.0 }
 0xa8a   : > { %v5176_v1 = vpop.eup %4260  ;;  %4272 = vpow2.f32 %v2919_v26  ;;  %v2927_v28 = vmul.f32 1.442695, %v2915_v51  ;;  %v2929_v16 = vmul.f32 1.442695, %v2916_v2  ;;  %vm2779_vm10 = vcmp.ge.f32.partialorder %v5157_v53, 0.0 }
 0xa8b   : > { %v5182_v39 = vpop.eup %4262  ;;  %v2831_v4 = vmul.f32 1.0614054, %v5176_v1  ;;  %4274 = vrcp.f32 %v2813_v25  ;;  %v2806_v22 = vmul.f32 0.3275911, %v5216_v9  ;;  %vm2781_vm11 = vcmp.ge.f32.partialorder %v5164_v13, 0.0 }
 0xa8c   : > { %v2832_v30 = vmul.f32 1.0614054, %v5182_v39  ;;  %v5191_v17 = vpop.eup %4264  ;;  %4276 = vpow2.f32 %v2921_v36  ;;  %vm2780_vm12 = vcmp.ge.f32.partialorder %v5160_v35, 0.0  ;;  %vm2782_vm13 = vcmp.ge.f32.partialorder %v5199_v59, 0.0  ;;  %v3623_v59 = vld [vmem:[%s815_s22] ss:$0 sm:$0xff] }
 0xa8d   : > { %v2839_v0 = vadd.f32 -1.4531521, %v2831_v4  ;;  %v2833_v10 = vmul.f32 1.0614054, %v5191_v17  ;;  %v5195_v48 = vpop.eup %4266  ;;  %4278 = vpow2.f32 %v2923_v40  ;;  %s5486_s22 = sld [smem:[#allocation27_spill]] (!%p3640_p1) }
 0xa8e   : > { %v2840_v32 = vadd.f32 -1.4531521, %v2832_v30  ;;  %v2834_v34 = vmul.f32 1.0614054, %v5195_v48  ;;  %4280 = vpow2.f32 %v2925_v61 }
 0xa8f   : > { %v2847_v43 = vmul.f32 %v5176_v1, %v2839_v0  ;;  %v2841_v14 = vadd.f32 -1.4531521, %v2833_v10  ;;  %v2814_v0 = vadd.f32 1.0, %v2806_v22 }
 0xa90   : > { %v2848_v12 = vmul.f32 %v5182_v39, %v2840_v32  ;;  %v2842_v50 = vadd.f32 -1.4531521, %v2834_v34 }
 0xa91   : > { %v2855_v11 = vadd.f32 1.4214138, %v2847_v43  ;;  %v2849_v49 = vmul.f32 %v5191_v17, %v2841_v14  ;;  %4282 = vrcp.f32 %v2814_v0 }
 0xa92   : > { %v2856_v44 = vadd.f32 1.4214138, %v2848_v12  ;;  %v2850_v5 = vmul.f32 %v5195_v48, %v2842_v50  ;;  %v5221_v4 = vpop.eup %4268  ;;  %v2917_v12 = vmul.f32 %v2909_v7, %v5180_v24  ;;  %4284 = vpow2.f32 %v2927_v28 }
 0xa93   : > { %v2863_v19 = vmul.f32 %v5176_v1, %v2855_v11  ;;  %v2857_v20 = vadd.f32 1.4214138, %v2849_v49  ;;  %v5226_v29 = vpop.eup %4270  ;;  %v2835_v8 = vmul.f32 1.0614054, %v5221_v4 }
 0xa94   : > { %v2864_v27 = vmul.f32 %v5182_v39, %v2856_v44  ;;  %v2858_v26 = vadd.f32 1.4214138, %v2850_v5  ;;  %v4273_v36 = vpop.eup %4272  ;;  %v2836_v43 = vmul.f32 1.0614054, %v5226_v29 }
 0xa95   : > { %v2871_v3 = vadd.f32 -0.28449672, %v2863_v19  ;;  %v2865_v58 = vmul.f32 %v5191_v17, %v2857_v20  ;;  %v2843_v45 = vadd.f32 -1.4531521, %v2835_v8  ;;  %v5233_v40 = vpop.eup %4274  ;;  %v2931_v20 = vmul.f32 1.442695, %v2917_v12 }
 0xa96   : > { %v2872_v21 = vadd.f32 -0.28449672, %v2864_v27  ;;  %v2866_v25 = vmul.f32 %v5195_v48, %v2858_v26  ;;  %v2844_v34 = vadd.f32 -1.4531521, %v2836_v43  ;;  %v4277_v44 = vpop.eup %4276  ;;  %v2837_v49 = vmul.f32 1.0614054, %v5233_v40 }
 0xa97   : > { %v2879_v38 = vmul.f32 %v5176_v1, %v2871_v3  ;;  %v2873_v6 = vadd.f32 -0.28449672, %v2865_v58  ;;  %v2851_v19 = vmul.f32 %v5221_v4, %v2843_v45  ;;  %v4279_v5 = vpop.eup %4278  ;;  %4286 = vpow2.f32 %v2931_v20 }
 0xa98   : > { %v2880_v30 = vmul.f32 %v5182_v39, %v2872_v21  ;;  %v2874_v14 = vadd.f32 -0.28449672, %v2866_v25  ;;  %v2852_v27 = vmul.f32 %v5226_v29, %v2844_v34  ;;  %v2845_v3 = vadd.f32 -1.4531521, %v2837_v49 }
 0xa99   : > { %v2887_v32 = vadd.f32 0.2548296, %v2879_v38  ;;  %v2881_v11 = vmul.f32 %v5191_v17, %v2873_v6  ;;  %v4281_v38 = vpop.eup %4280  ;;  %4288 = vpow2.f32 %v2929_v16 }
 0xa9a   : > { %v2888_v10 = vadd.f32 0.2548296, %v2880_v30  ;;  %v2882_v24 = vmul.f32 %v5195_v48, %v2874_v14  ;;  %v2860_v22 = vadd.f32 1.4214138, %v2852_v27  ;;  %v2853_v28 = vmul.f32 %v5233_v40, %v2845_v3 }
 0xa9b   : > { %v2895_v15 = vmul.f32 %v5176_v1, %v2887_v32  ;;  %v2889_v51 = vadd.f32 0.2548296, %v2881_v11  ;;  %v2859_v1 = vadd.f32 1.4214138, %v2851_v19  ;;  %v2910_v30 = vsub.f32 0.0, %v5216_v9 }
 0xa9c   : > { %v2896_v61 = vmul.f32 %v5182_v39, %v2888_v10  ;;  %v2890_v39 = vadd.f32 0.2548296, %v2882_v24  ;;  %v2868_v32 = vmul.f32 %v5226_v29, %v2860_v22  ;;  %v2861_v25 = vadd.f32 1.4214138, %v2853_v28 }
 0xa9d   : > { %v2935_v50 = vmul.f32 %v4273_v36, %v2895_v15  ;;  %v2897_v7 = vmul.f32 %v5191_v17, %v2889_v51  ;;  %v2867_v26 = vmul.f32 %v5221_v4, %v2859_v1  ;;  %v2786_v17 = vsel %vm2778_vm9, 1.0, %v4401_v18  ;;  %v4283_v15 = vpop.eup %4282 }
 0xa9e   : > { %v2936_v2 = vmul.f32 %v4277_v44, %v2896_v61  ;;  %v2898_v36 = vmul.f32 %v5195_v48, %v2890_v39  ;;  %v2876_v12 = vadd.f32 -0.28449672, %v2868_v32  ;;  %v2869_v48 = vmul.f32 %v5233_v40, %v2861_v25  ;;  %v4285_v61 = vpop.eup %4284 }
 0xa9f   : > { %v2943_v21 = vsub.f32 1.0, %v2935_v50  ;;  %v2937_v0 = vmul.f32 %v4279_v5, %v2897_v7  ;;  %v2875_v6 = vadd.f32 -0.28449672, %v2867_v26  ;;  %v2918_v11 = vmul.f32 %v2910_v30, %v5216_v9 }
 0xaa0   : > { %v2944_v58 = vsub.f32 1.0, %v2936_v2  ;;  %v2938_v45 = vmul.f32 %v4281_v38, %v2898_v36  ;;  %v2884_v44 = vmul.f32 %v5226_v29, %v2876_v12  ;;  %v2838_v49 = vmul.f32 1.0614054, %v4283_v15 }
 0xaa1   : > { %v2951_v8 = vmul.f32 %v2943_v21, %v5172_v56  ;;  %v2945_v10 = vsub.f32 1.0, %v2937_v0  ;;  %v2883_v56 = vmul.f32 %v5221_v4, %v2875_v6  ;;  %v2762_v24 = vmul.f32 0.5, %v5141_v46 }
 0xaa2   : > { %v2952_v43 = vmul.f32 %v2944_v58, %v5205_v42  ;;  %v2946_v34 = vsub.f32 1.0, %v2938_v45  ;;  %v2877_v42 = vadd.f32 -0.28449672, %v2869_v48  ;;  %v2892_v2 = vadd.f32 0.2548296, %v2884_v44 }
 0xaa3   : > { %v2959_v14 = vadd.f32 1.0, %v2951_v8  ;;  %v2953_v63 = vmul.f32 %v2945_v10, %v5213_v62  ;;  %v2891_v19 = vadd.f32 0.2548296, %v2883_v56  ;;  %v2846_v1 = vadd.f32 -1.4531521, %v2838_v49 }
 0xaa4   : > { %v2960_v50 = vadd.f32 1.0, %v2952_v43  ;;  %v2954_v27 = vmul.f32 %v2946_v34, %v2786_v17  ;;  %v2885_v9 = vmul.f32 %v5233_v40, %v2877_v42  ;;  %v2933_v5 = vmul.f32 1.442695, %v2918_v11 }
 0xaa5   : > { %v2961_v51 = vadd.f32 1.0, %v2953_v63  ;;  %v2899_v16 = vmul.f32 %v5221_v4, %v2891_v19  ;;  %v2967_v62 = vmul.f32 %v2959_v14, %v5166_v47  ;;  %v2854_v39 = vmul.f32 %v4283_v15, %v2846_v1  ;;  %v4287_v4 = vpop.eup %4286 }
 0xaa6   : > { %v2962_v20 = vadd.f32 1.0, %v2954_v27  ;;  %v2893_v7 = vadd.f32 0.2548296, %v2885_v9  ;;  %v2968_v46 = vmul.f32 %v2960_v50, %v5168_v52  ;;  %v2900_v26 = vmul.f32 %v5226_v29, %v2892_v2  ;;  %v4289_v8 = vpop.eup %4288 }
 0xaa7   : > { %v2969_v3 = vmul.f32 %v2961_v51, %v5174_v41  ;;  %v2939_v21 = vmul.f32 %v4285_v61, %v2899_v16  ;;  %v2862_v47 = vadd.f32 1.4214138, %v2854_v39  ;;  %v2787_v41 = vsel %vm2779_vm10, 1.0, %v4401_v18 }
 0xaa8   : > { %v2970_v38 = vmul.f32 %v2962_v20, %v2762_v24  ;;  %v2901_v28 = vmul.f32 %v5233_v40, %v2893_v7  ;;  %4290 = vpow2.f32 %v2933_v5  ;;  %v2940_v52 = vmul.f32 %v4289_v8, %v2900_v26 }
 0xaa9   : > { %v2975_v22 = vpack.c.bf16 %v2969_v3, %v2967_v62  ;;  %v2947_v58 = vsub.f32 1.0, %v2939_v21  ;;  %v2870_v36 = vmul.f32 %v4283_v15, %v2862_v47  ;;  %v2789_v29 = vsel %vm2781_vm11, 1.0, %v4401_v18 }
 0xaaa   : > { %v2976_v30 = vpack.c.bf16 %v2970_v38, %v2968_v46  ;;  %v2941_v0 = vmul.f32 %v4287_v4, %v2901_v28  ;;  %v2763_v43 = vmul.f32 0.5, %v5149_v54  ;;  %v2765_v10 = vmul.f32 0.5, %v5154_v37 }
 0xaab   : > { %v2955_v53 = vmul.f32 %v2947_v58, %v2787_v41  ;;  %v2878_v17 = vadd.f32 -0.28449672, %v2870_v36  ;;  %v2948_v45 = vsub.f32 1.0, %v2940_v52  ;;  %v2788_v63 = vsel %vm2780_vm12, 1.0, %v4401_v18  ;;  %v3214_v41 = vld [vmem:[%s5484_s27 + $0x10] sm:$0xff] (!%p3640_p1)  ;;  %v3216_v36 = vld [vmem:[%s5484_s27 + $0x20] sm:$0xff] (!%p3640_p1) }
 0xaac   : > { %3146 = vmatprep.mubr.bf16.mxu1 %v2976_v30  ;;  %v2949_v32 = vsub.f32 1.0, %v2941_v0  ;;  %v2790_v37 = vsel %vm2782_vm13, 1.0, %v4401_v18  ;;  %v2764_v42 = vmul.f32 0.5, %v5152_v55  ;;  %v2766_v49 = vmul.f32 0.5, %v5188_v60  ;;  %v3217_v52 = vld [vmem:[%s5484_s27 + $0x28] sm:$0xff] (!%p3640_p1) }
 0xaad   : > { %3147 = vmatmul.mubr.bf16.vlgmr.msra.gmra.mrb[36].mxu1 %v2975_v22  ;;  %v2963_v6 = vadd.f32 1.0, %v2955_v53  ;;  %v2886_v25 = vmul.f32 %v4283_v15, %v2878_v17  ;;  %v2956_v34 = vmul.f32 %v2948_v45, %v2788_v63  ;;  %v4402_v30 = vmov (!%p3640_p1), 0.0|0.0   ;;  %v3215_v53 = vld [vmem:[%s5484_s27 + $0x18] sm:$0xff] (!%p3640_p1) }
 0xaae   : > { %v2957_v40 = vmul.f32 %v2949_v32, %v2789_v29  ;;  %3920 = vmatprep.subr.bf16.mxu0 (!%p3640_p1), %v4402_v30  ;;  %v3924_v0 = vpack.c.bf16 (!%p3640_p1), %v3215_v53, %v3214_v41  ;;  %v3927_v32 = vpack.c.bf16 (!%p3640_p1), %v3217_v52, %v3216_v36 }
 0xaaf   : > { %v2894_v12 = vadd.f32 0.2548296, %v2886_v25  ;;  %v2971_v56 = vmul.f32 %v2963_v6, %v2763_v43  ;;  %v2964_v19 = vadd.f32 1.0, %v2956_v34  ;;  %v3218_v43 = vld [vmem:[%s5484_s27 + $0x30] sm:$0xff] (!%p3640_p1)  ;;  %v3224_v34 = vld [vmem:[%s5484_s27 + $0x60] sm:$0xff] (!%p3640_p1) }
 0xab0   : > { %v2965_v13 = vadd.f32 1.0, %v2957_v40 }
 0xab1   : > { %v2902_v11 = vmul.f32 %v4283_v15, %v2894_v12  ;;  %v2972_v15 = vmul.f32 %v2964_v19, %v2764_v42  ;;  %v3221_v12 = vld [vmem:[%s5484_s27 + $0x48] sm:$0xff] (!%p3640_p1) }
 0xab2   : > { %v2973_v48 = vmul.f32 %v2965_v13, %v2765_v10  ;;  %v4291_v14 = vpop.eup %4290  ;;  %v3219_v10 = vld [vmem:[%s5484_s27 + $0x38] sm:$0xff] (!%p3640_p1)  ;;  %v3220_v13 = vld [vmem:[%s5484_s27 + $0x40] sm:$0xff] (!%p3640_p1) }
 0xab3   : > { %v2942_v44 = vmul.f32 %v4291_v14, %v2902_v11  ;;  %v3930_v45 = vpack.c.bf16 (!%p3640_p1), %v3219_v10, %v3218_v43  ;;  %v3223_v11 = vld [vmem:[%s5484_s27 + $0x58] sm:$0xff] (!%p3640_p1)  ;;  %v4404_v14 = vmov (!%p3640_p1), 0.0  }
 0xab4   : > { %v2977_v61 = vpack.c.bf16 %v2973_v48, %v2971_v56  ;;  %v3933_v56 = vpack.c.bf16 (!%p3640_p1), %v3221_v12, %v3220_v13  ;;  %v3222_v48 = vld [vmem:[%s5484_s27 + $0x50] sm:$0xff] (!%p3640_p1)  ;;  %3917 = vmatprep.mubr.msk.f32.mxu0 (!%p3640_p1), %vm4403_vm0, %v4404_v14 }
 0xab5   : > { %v2950_v54 = vsub.f32 1.0, %v2942_v44  ;;  %v3936_v63 = vpack.c.bf16 (!%p3640_p1), %v3223_v11, %v3222_v48  ;;  %v3225_v44 = vld [vmem:[%s5484_s27 + $0x68] sm:$0xff] (!%p3640_p1) }
 0xab7   : > { %v2958_v35 = vmul.f32 %v2950_v54, %v2790_v37  ;;  %v3226_v54 = vld [vmem:[%s5484_s27 + $0x70] sm:$0xff] (!%p3640_p1)  ;;  %v3227_v37 = vld [vmem:[%s5484_s27 + $0x78] sm:$0xff] (!%p3640_p1) }
 0xab8   : > { %v3942_v19 = vpack.c.bf16 (!%p3640_p1), %v3227_v37, %v3226_v54 }
 0xab9   : > { %v2966_v50 = vadd.f32 1.0, %v2958_v35 }
 0xabb   : > { %v2974_v51 = vmul.f32 %v2966_v50, %v2766_v49 }
 0xabd   : > { %v2978_v24 = vpack.c.bf16 %v2974_v51, %v2972_v15  ;;  %v3641_v15 = vld [vmem:[%s5485_s3] ss:$0 sm:$0xff] (!%p3640_p1) }
 0xabf   : > { %3154 = vmatprep.mubr.bf16.mxu1 %v2978_v24  ;;  %v3642_v24 = vld [vmem:[%s5486_s22] ss:$0 sm:$0xff] (!%p3640_p1) }
 0xac0   : > { %3155 = vmatmul.mubr.bf16.gmra.mrb[40].mxu1 %v2977_v61  ;;  %v3939_v61 = vpack.c.bf16 (!%p3640_p1), %v3225_v44, %v3224_v34 }
 0xb80   : > { %v3720_v27 = vpop.f32.mrb[36].mxu1 }
 0xb81   : > { %v3721_v16 = vpop.f32.mrb[37].mxu1 }
 0xb82   : > { %v3722_v18 = vadd.f32 %v3721_v16, %v3720_v27  ;;  %v3723_v2 = vpop.f32.mrb[38].mxu1  ;;  %v3643_v16 = vld [vmem:[%s5487_s1] ss:$0 sm:$0xff] (!%p3640_p1) }
 0xb83   : > { %v3724_v9 = vpop.f32.mrb[39].mxu1 }
 0xb84   : > { %v3149_v1 = vadd.f32 %v3722_v18, %v3623_v59  ;;  %v3725_v55 = vadd.f32 %v3724_v9, %v3723_v2 }
 0xb86   : > { %v3163_v60 = vadd.f32 %v3149_v1, %v5069_v23  ;;  %v3152_v62 = vadd.f32 %v3725_v55, %v3623_v59 }
 0xb88   : > { %3167 = vst [vmem:[#allocation2] sm:$0xff] %v3163_v60  ;;  %v3164_v3 = vadd.f32 %v3152_v62, %v5071_v57 }
 0xb8a   : > { %3168 = vst [vmem:[#allocation2 + $0x8] sm:$0xff] %v3164_v3 }
 0xb8f   : > { %v3175_v23 = vld [vmem:[#allocation2] sm:$0x1] (!%p3640_p1) }
 0xb93   : > { %v3726_v20 = vpop.f32.mrb[40].mxu1 }
 0xb94   : > { %v3727_v5 = vpop.f32.mrb[41].mxu1 }
 0xb95   : > { %v3728_v21 = vadd.f32 %v3727_v5, %v3726_v20  ;;  %v3729_v7 = vpop.f32.mrb[42].mxu1 }
 0xb96   : > { %v3730_v39 = vpop.f32.mrb[43].mxu1 }
 0xb97   : > { %v3157_v46 = vadd.f32 %v3728_v21, %v3623_v59  ;;  %v3731_v22 = vadd.f32 %v3730_v39, %v3729_v7  ;;  %3174 = sbr.rel (%p3640_p1) target bundleno = 3510 (0xdb6), region = 104 }
 0xb99   : > { %v3165_v38 = vadd.f32 %v3157_v46, %v5074_v33  ;;  %v3160_v4 = vadd.f32 %v3731_v22, %v3623_v59  ;;  %v3212_v33 = vld [vmem:[%s5483_s23] sm:$0xff] (!%p3640_p1) }
 0xb9b   : > { %3169 = vst [vmem:[#allocation2 + $0x10] sm:$0xff] %v3165_v38  ;;  %v3166_v58 = vadd.f32 %v3160_v4, %v5078_v31  ;;  %v3213_v31 = vld [vmem:[%s5484_s27 + $0x8] sm:$0xff] (!%p3640_p1) }
 0xb9c   : > { %v3921_v8 = vpack.c.bf16 (!%p3640_p1), %v3213_v31, %v3212_v33 }
 0xb9d   : > { %3170 = vst [vmem:[#allocation2 + $0x18] sm:$0xff] %v3166_v58 }
 0xb9e   : > { %3922 = vmatpush3.bf16.msra.mxu0 %v3921_v8 }
 0xb9f   : > { %3923 = vmatprep.subr.bf16.mxu0 %v4402_v30 }
 0xba2   : > { %v3176_v57 = vld [vmem:[#allocation2 + $0x10] sm:$0x1]  ;;  %3925 = vmatpush3.bf16.msra.mxu0 %v3924_v0 }
 0xba3   : > { %v3178_v26 = vrot.slane %v3176_v57, 7  ;;  %3926 = vmatprep.subr.bf16.mxu0 %v4402_v30 }
 0xba5   : > { %v3181_v28 = vsel %vm3180_vm14, %v3175_v23, %v3178_v26 }
 0xba6   : > { %v3185_v47 = vsel %vm3184_vm15, %v3181_v28, 0.0  ;;  %3928 = vmatpush3.bf16.msra.mxu0 %v3927_v32 }
 0xba7   : > { %3186 = vadd.xlane.f32.xlu0 %v3185_v47  ;;  %3929 = vmatprep.subr.bf16.mxu0 %v4402_v30 }
 0xbaa   : > { %3931 = vmatpush3.bf16.msra.mxu0 %v3930_v45 }
 0xbab   : > { %3932 = vmatprep.subr.bf16.mxu0 %v4402_v30 }
 0xbae   : > { %3934 = vmatpush3.bf16.msra.mxu0 %v3933_v56 }
 0xbaf   : > { %3935 = vmatprep.subr.bf16.mxu0 %v4402_v30 }
 0xbb2   : > { %3937 = vmatpush3.bf16.msra.mxu0 %v3936_v63 }
 0xbb3   : > { %3938 = vmatprep.subr.bf16.mxu0 %v4402_v30 }
 0xbb6   : > { %3940 = vmatpush3.bf16.msra.mxu0 %v3939_v61 }
 0xbb7   : > { %3941 = vmatprep.subr.bf16.mxu0 %v4402_v30 }
 0xbba   : > { %3943 = vmatpush3.bf16.msra.mxu0 %v3942_v19 }
 0xc34   : > { %v3187_v17 = vpop.xlane.xlu0 %3186 }
 0xc35   : > { %v3188_v29 = vmul.f32 0.0078125, %v3187_v17 }
 0xc37   : > { %v3189_v6 = vsub.f32 %v3181_v28, %v3188_v29 }
 0xc39   : > { %v3190_v40 = vmul.f32 %v3189_v6, %v3189_v6 }
 0xc3b   : > { %v3191_v25 = vsel %vm3184_vm15, %v3190_v40, 0.0 }
 0xc3c   : > { %3192 = vadd.xlane.f32.xlu0 %v3191_v25 }
 0xcc9   : > { %v3193_v35 = vpop.xlane.xlu0 %3192 }
 0xcca   : > { %v3194_v42 = vmul.f32 0.0078125, %v3193_v35 }
 0xccc   : > { %v3195_v49 = vadd.f32 1e-05, %v3194_v42 }
 0xcce   : > { %4296 = vrsqrt.f32 %v3195_v49 }
 0xcd8   : > { %v4297_v50 = vpop.eup %4296 }
 0xcd9   : > { %v3197_v51 = vmul.f32 %v4297_v50, %v3189_v6 }
 0xcdb   : > { %v3204_v27 = vmul.f32 %v3641_v15, %v3197_v51 }
 0xcdd   : > { %v3211_v59 = vadd.f32 %v3642_v24, %v3204_v27 }
 0xcdf   : > { %3918 = vmatmul.mubr.f32.vlgmr.msra.gmra.mrb[0].mxu0 %v3211_v59 }
 0xdb2   : > { %v3301_v18 = vpop.f32.mrb[0].mxu0 }
 0xdb3   : > { %v3302_v2 = vadd.f32 %v3643_v16, %v3301_v18  ;;  %v3919_v9 = vpop.f32.mrb[1].mxu0 }
 0xdb5   : > { %3306 = vst.msk [vmem:[%s762_s5] sm:$0x3] %vm3305_vm1, %v3302_v2 }
 0xdb6 PF: > { %s5488_s30 = sld [smem:[#allocation10_spill]]  ;;  %s5489_s18 = sld [smem:[#allocation7_spill]] }
 0xdb7   : > { %s5491_s20 = sld [smem:[#allocation30_spill]]  ;;  %s3321_s21 = sshll.u32 %s762_s5, 4  ;;  %s3322_s21 = int_to_ptr.vmem [resolvable:$true] %s3321_s21 }
 0xdb8   : > { %s4298_s3 = scalar_lea.vmem %s3322_s21, 32  ;;  %s4405_s19 = smov [#allocation3]  }
 0xdb9   : > { %p4299_p2 = scmp.ne.s32.totalorder %s3322_s21, %s4298_s3  ;;  %s4302_s28 = sshll.u32 %s4405_s19, 4  ;;  %s4303_s28 = int_to_ptr.vmem [resolvable:$false] %s4302_s28 }
 0xdba   : > { %s4304_s22 = scalar_lea.vmem %s4303_s28, 64  ;;  %p4305_p6 = scmp.lt.s32.totalorder %s3322_s21, %s4303_s28 }
 0xdbb   : > { %p4300_p4 = pnand %p4299_p2, %p4555_p3  ;;  %p4306_p7 = scmp.lt.s32.totalorder %s4304_s22, %s4298_s3 }
 0xdbc   : > { %s3645_s29 = sshll.u32 %s5488_s30, 5  ;;  %s5493_s2 = sand.u32 1, %s5489_s18  }
 0xdbd   : > { %s5492_s26 = smov %s5491_s20  ;;  %s5353_s17 = scalar_lea.hbm %s5491_s20, %s3645_s29 }
 0xdbe   : > { %s3308_s15 = scalar_lea.sflag [#allocation4], %s5493_s2  ;;  %p4301_p5 = pneg %p4300_p4 }
 0xdbf   : > { %p4307_p8 = por %p4306_p7, %p4305_p6 }
 0xdc1   : > { %p4308_p10 = pnand %p4307_p8, %p4301_p5 }
 0xdc3   : > { %4311 = shalt.err (!%p4308_p10)
}
 0xdc4   : > { %s4312_s5 = scalar_lea.hbm %s5353_s17, 32  ;;  %s4316_s23 = scalar_lea.hbm %s5492_s26, 64 }
 0xdc5   : > { %p4313_p11 = scmp.ne.s32.totalorder %s5353_s17, %s4312_s5  ;;  %p4317_p0 = scmp.lt.u32.totalorder %s5353_s17, %s5492_s26 }
 0xdc6   : > { %p4318_p1 = scmp.lt.u32.totalorder %s4316_s23, %s4312_s5  ;;  %p4320_p4 = scmp.lt.u32.totalorder %s4312_s5, %s5353_s17 }
 0xdc7   : > { %p4314_p12 = pnand %p4313_p11, %p4555_p3 }
 0xdc8   : > { %p4319_p2 = por %p4318_p1, %p4317_p0 }
 0xdc9   : > { %p4315_p13 = pneg %p4314_p12 }
 0xdca   : > { %p4321_p5 = por %p4320_p4, %p4319_p2 }
 0xdcc   : > { %p4322_p6 = pnand %p4321_p5, %p4315_p13 }
 0xdce   : > { %4325 = shalt.err (!%p4322_p6)
}
 0xdcf   : > { %3970 = dma.vmem_to_hbm [thread:$0]  (%p4555_p3), %s3322_s21, 32, %s5353_s17, %s3308_s15  }
 0xdd0 PF: > { %s5494_s18 = sld [smem:[#allocation13_spill]]  ;;  %s5495_s29 = sld [smem:[#allocation6_spill]] }
 0xdd6   : > { %p3976_p7 = scmp.ge.s32.totalorder %s5494_s18, 2  ;;  %s3333_s24 = sand.u32 1, %s5495_s29  }
 0xdd7   : > { %s3334_s20 = scalar_lea.sflag [#allocation4], %s3333_s24 }
 0xdd8   : > { %p3973_p8 = pnand %p3976_p7, %p4565_p9 }
 0xdda   : > { %4359 = dma.done.wait (!%p3973_p8), %s3334_s20, 32  }
 0xddb   : > { %4361 = vsyncadd (!%p3973_p8), %s3334_s20, 4294967264  ;;  %s32_s23 = sadd.s32 1, %s5494_s18   ;;  %s5497_s0 = sld [smem:[#allocation7_spill]] }
 0xddc   : > { %p29_p10 = scmp.ge.s32.totalorder %s32_s23, 6   ;;  %s5498_s30 = sld [smem:[#allocation8_spill]] }
 0xddd   : > { %s5499_s20 = sld [smem:[#allocation18_spill]]  ;;  %s5500_s21 = sld [smem:[#allocation11_spill]] }
 0xdde   : > { %s5501_s1 = sld [smem:[#allocation12_spill]]  ;;  %s5502_s22 = sld [smem:[#allocation14_spill]] }
 0xddf   : > { %s5503_s2 = sld [smem:[#allocation16_spill]]  ;;  %31 = sbr.rel (!%p29_p10) target bundleno = 18 (0x12), region = 175 }
 0xde6   :  { %3339 = vsyncpa [#allocation4], 1 }
 0xde7   :  { %3341 = vsyncpa [#allocation4 + $0x1], 1 }

</bundles_post_ra>
